<compile_context>
chip_gen: v7x
topology: tpu7x:2x2x1
jax: 0.10.0
libtpu: 0.0.40
codegen_flags: <defaults>
</compile_context>

<pallas_src>
import functools

import jax
import jax.numpy as jnp
from jax.experimental import pallas as pl
from jax.experimental.pallas import tpu as pltpu


# ----------------------------- Pallas kernel ------------------------------ #
def self_attention_kernel(x_ref, w_ref, b_ref, gamma_ref, o_ref,
                          *, c8_pad, n_ch, batch_block, use_bf16_exp):
    f32 = jnp.float32
    bf16 = jnp.bfloat16

    gamma = gamma_ref[0]                       # SMEM scalar
    w = w_ref[...]                             # (2*c8_pad + C, C) f32
    bias = b_ref[...]                          # (2*c8_pad + C, 1) f32

    for b in range(batch_block):               # small static unrolled batch loop
        x = x_ref[b]                           # (C, HW), lanes = HW

        # Fused q/k/v 1x1-conv projection: one matmul instead of three.
        qkv = jnp.dot(w, x, preferred_element_type=f32) + bias   # (2*c8_pad+C, HW)

        # Free 8-row-aligned slices; padded rows of q/k are exactly zero.
        q = qkv[0:c8_pad].astype(bf16)                            # (c8_pad, HW)
        k = qkv[c8_pad:2 * c8_pad].astype(bf16)                   # (c8_pad, HW)
        v = qkv[2 * c8_pad:2 * c8_pad + n_ch].astype(bf16)        # (C, HW)

        # energy^T: eT[m, n] = sum_d k[d, m] * q[d, n]  (== energy[n, m]).
        # bf16 operands -> single MXU pass; f32 accumulation; zero pad rows
        # contribute nothing.
        eT = jax.lax.dot_general(k, q, (((0,), (0,)), ((), ())),
                                 preferred_element_type=f32)      # (HWk, HWq)

        # softmax over keys m == reduction over sublanes (axis 0).
        eT = eT - jnp.max(eT, axis=0, keepdims=True)
        if use_bf16_exp:
            # bf16 EUP (v6e / v7x): packed exp, and p already feeds v@p as bf16.
            p = jnp.exp(eT.astype(bf16))                          # (HWk, HWq) bf16
            ones_row = jnp.ones((1, p.shape[0]), bf16)
            # f32-accumulated denominator via a ones-row MXU matmul.
            denom = jnp.dot(ones_row, p, preferred_element_type=f32)   # (1, HWq)
        else:
            # v5e: no bf16 EUP — keep exp in f32, cast p afterwards.
            p32 = jnp.exp(eT)
            denom = jnp.sum(p32, axis=0, keepdims=True)           # (1, HWq) f32
            p = p32.astype(bf16)

        # out_un[c, n] = sum_m v[c, m] * p[m, n]  — bf16 operands, f32 acc.
        out_un = jnp.dot(v, p, preferred_element_type=f32)        # (C, HWq)

        # Fold gamma into the per-column softmax scale: one (C, HW) multiply.
        scale = gamma * pl.reciprocal(denom, approx=True)         # (1, HWq)
        o_ref[b] = out_un * scale + x


# ------------------------------- wrapper ----------------------------------- #
def self_attention_forward(x_nchw, params):
    B, C, H, W = x_nchw.shape
    HW = H * W
    c8 = params["wq"].shape[0]
    c8_pad = ((c8 + 7) // 8) * 8                      # 8-row (sublane) alignment
    R = 2 * c8_pad + C                                # packed-weight rows

    # The full (HW, HW) f32 score matrix must fit comfortably in VMEM on every
    # generation (v7x only has 64 MiB).  HW=256 -> 256 KiB; fine.
    if HW > 2048:
        # TODO(synk): add a key-blocked (flash-style) softmax path for large
        # spatial dims instead of materializing the full (HW, HW) scores.
        raise NotImplementedError("HW too large for single-panel softmax")

    # Static (trace-time) hardware dispatch.
    try:
        kind = jax.devices()[0].device_kind.lower()
    except Exception:  # pragma: no cover - non-TPU fallback, still correct
        kind = ""
    is_v7 = ("v7" in kind) or ("tpu7" in kind.replace(" ", ""))
    use_bf16_exp = not any(tag in kind for tag in ("v2", "v3", "v4", "v5"))

    # Batch blocking: amortize per-grid-step overhead on single-TC chips;
    # keep >= 1 grid step per TensorCore on v7x so batches shard across cores.
    if is_v7:
        batch_block = 1
    else:
        batch_block = 1
        for cand in (8, 4, 2):
            if B % cand == 0:
                batch_block = cand
                break
    grid = (B // batch_block,)

    # Free layout change: NCHW -> (B, C, HW); lane axis = HW (lane-dense).
    x2d = x_nchw.reshape(B, C, HW)

    # Pack [Wq; Wk; Wv] (zero-padded to 8-row boundaries) + matching bias.
    w_pack = jnp.zeros((R, C), jnp.float32)
    w_pack = w_pack.at[0:c8, :].set(params["wq"])
    w_pack = w_pack.at[c8_pad:c8_pad + c8, :].set(params["wk"])
    w_pack = w_pack.at[2 * c8_pad:2 * c8_pad + C, :].set(params["wv"])
    b_pack = jnp.zeros((R, 1), jnp.float32)
    b_pack = b_pack.at[0:c8, 0].set(params["bq"])
    b_pack = b_pack.at[c8_pad:c8_pad + c8, 0].set(params["bk"])
    b_pack = b_pack.at[2 * c8_pad:2 * c8_pad + C, 0].set(params["bv"])
    gamma = params["gamma"]                           # (1,) f32 -> SMEM

    kernel = functools.partial(
        self_attention_kernel,
        c8_pad=c8_pad, n_ch=C, batch_block=batch_block, use_bf16_exp=use_bf16_exp)

    dim_sem = (pltpu.CORE_PARALLEL,) if is_v7 else ("parallel",)

    out2d = pl.pallas_call(
        kernel,
        out_shape=jax.ShapeDtypeStruct((B, C, HW), jnp.float32),
        grid_spec=pltpu.PrefetchScalarGridSpec(
            num_scalar_prefetch=0,
            grid=grid,
            in_specs=[
                pl.BlockSpec((batch_block, C, HW), lambda b: (b, 0, 0)),  # x
                pl.BlockSpec((R, C), lambda b: (0, 0)),                   # packed W
                pl.BlockSpec((R, 1), lambda b: (0, 0)),                   # packed b
                pl.BlockSpec(memory_space=pltpu.MemorySpace.SMEM),        # gamma
            ],
            out_specs=pl.BlockSpec((batch_block, C, HW), lambda b: (b, 0, 0)),
        ),
        compiler_params=pltpu.CompilerParams(
            dimension_semantics=dim_sem,
            vmem_limit_bytes=16 * 1024 * 1024),       # actual footprint << 1 MiB
    )(x2d, w_pack, b_pack, gamma)

    return out2d.reshape(B, C, H, W)


# ------------------------------ parameters --------------------------------- #
def make_params(key, C):
    c8 = C // 8
    ks = jax.random.split(key, 6)
    n = jax.random.normal
    return {
        # Conv2d(C, C//8, 1) / Conv2d(C, C//8, 1) / Conv2d(C, C, 1)
        "wq": 0.2 * n(ks[0], (c8, C), jnp.float32),
        "bq": 0.1 * n(ks[1], (c8,), jnp.float32),
        "wk": 0.2 * n(ks[2], (c8, C), jnp.float32),
        "bk": 0.1 * n(ks[3], (c8,), jnp.float32),
        "wv": 0.2 * n(ks[4], (C, C), jnp.float32),
        "bv": 0.1 * n(ks[5], (C,), jnp.float32),
        # torch initializes gamma to 0 (which disables the attention branch);
        # use a nonzero deterministic value so the attention path is exercised.
        "gamma": jnp.array([0.5], jnp.float32),
    }


# --------------------------- pure-JAX reference ---------------------------- #
def ref_forward(x, params):
    B, C, H, W = x.shape
    HW = H * W

    def conv1x1(w, b):
        return jnp.einsum("oc,bchw->bohw", w, x) + b[None, :, None, None]

    q = conv1x1(params["wq"], params["bq"]).reshape(B, -1, HW).transpose(0, 2, 1)
    k = conv1x1(params["wk"], params["bk"]).reshape(B, -1, HW)
    v = conv1x1(params["wv"], params["bv"]).reshape(B, -1, HW)
    energy = jnp.einsum("bnd,bdm->bnm", q, k)
    attn = jax.nn.softmax(energy, axis=-1)
    out = jnp.einsum("bcm,bnm->bcn", v, attn).reshape(B, C, H, W)
    return params["gamma"][0] * out + x


# --------------------------------- main ------------------------------------ #
if __name__ == "__main__":
    key = jax.random.PRNGKey(0)
    kx, kp = jax.random.split(key)
    # in_dim must be >= 8 (Conv2d(in_dim, in_dim // 8, 1)); use C=16, 16x16 maps.
    B, C, H, W = 2, 16, 16, 16
    x = jax.random.normal(kx, (B, C, H, W), jnp.float32)
    params = make_params(kp, C)

    out = jax.block_until_ready(self_attention_forward(x, params))

    ref = ref_forward(x, params)
    err = float(jnp.max(jnp.abs(out - ref)))
    assert out.shape == (B, C, H, W)
    assert bool(jnp.isfinite(out).all())
    # bf16 energy / attention probs / (optionally) bf16 exp + approx reciprocal:
    # expected max |err| ~ a few 1e-3.
    assert err < 3e-2, f"max abs error vs reference = {err}"
    print("KERNEL_OK")
</pallas_src>

<mosaic_0001>
module attributes {stable_mosaic.version = 11 : i64} {
  func.func @self_attention_kernel(%arg0: i32, %arg1: memref<2x16x256xf32, #tpu.memory_space<vmem>>, %arg2: memref<32x16xf32, #tpu.memory_space<vmem>>, %arg3: memref<32x1xf32, #tpu.memory_space<vmem>>, %arg4: memref<1xf32, #tpu.memory_space<smem>>, %arg5: memref<2x16x256xf32, #tpu.memory_space<vmem>>) attributes {dimension_semantics = [#tpu.dimension_semantics<parallel>], iteration_bounds = array<i64: 1>, scalar_prefetch = 0 : i64, scratch_operands = 0 : i64, tpu.core_type = #tpu.core_type<tc>, window_params = [{transform_indices = @transform_0, window_bounds = array<i64: 2, 16, 256>}, {pipeline_mode = #tpu.pipeline_mode<synchronous>, transform_indices = @transform_1, window_bounds = array<i64: 32, 16>}, {pipeline_mode = #tpu.pipeline_mode<synchronous>, transform_indices = @transform_2, window_bounds = array<i64: 32, 1>}, {transform_indices = @transform_3, window_bounds = array<i64: 1>}, {transform_indices = @transform_4, window_bounds = array<i64: 2, 16, 256>}]} {
    %c0 = arith.constant 0 : index
    %0 = memref.load %arg4[%c0] : memref<1xf32, #tpu.memory_space<smem>>
    %c0_0 = arith.constant 0 : index
    %c0_1 = arith.constant 0 : index
    %1 = vector.load %arg2[%c0_0, %c0_1] : memref<32x16xf32, #tpu.memory_space<vmem>>, vector<32x16xf32>
    %c0_2 = arith.constant 0 : index
    %c0_3 = arith.constant 0 : index
    %2 = vector.load %arg3[%c0_2, %c0_3] : memref<32x1xf32, #tpu.memory_space<vmem>>, vector<32x1xf32>
    %c0_4 = arith.constant 0 : index
    %c0_5 = arith.constant 0 : index
    %c0_6 = arith.constant 0 : index
    %3 = vector.load %arg1[%c0_4, %c0_5, %c0_6] : memref<2x16x256xf32, #tpu.memory_space<vmem>>, vector<1x16x256xf32>
    %4 = vector.shape_cast %3 : vector<1x16x256xf32> to vector<16x256xf32>
    %cst = arith.constant dense<0.000000e+00> : vector<32x256xf32>
    %5 = tpu.matmul %1, %4, %cst {dimension_numbers = #tpu.dot_dimension_numbers<[1], [0], [0], [1], [0, 0, 1, 1], [], []>} : vector<32x16xf32>, vector<16x256xf32>, vector<32x256xf32> -> vector<32x256xf32>
    %6 = vector.broadcast %2 : vector<32x1xf32> to vector<32x256xf32>
    %7 = arith.addf %5, %6 : vector<32x256xf32>
    %8 = vector.extract_strided_slice %7 {offsets = [0, 0], sizes = [8, 256], strides = [1, 1]} : vector<32x256xf32> to vector<8x256xf32>
    %9 = arith.truncf %8 : vector<8x256xf32> to vector<8x256xbf16>
    %10 = vector.extract_strided_slice %7 {offsets = [8, 0], sizes = [8, 256], strides = [1, 1]} : vector<32x256xf32> to vector<8x256xf32>
    %11 = arith.truncf %10 : vector<8x256xf32> to vector<8x256xbf16>
    %12 = vector.extract_strided_slice %7 {offsets = [16, 0], sizes = [16, 256], strides = [1, 1]} : vector<32x256xf32> to vector<16x256xf32>
    %13 = arith.truncf %12 : vector<16x256xf32> to vector<16x256xbf16>
    %cst_7 = arith.constant dense<0.000000e+00> : vector<256x256xf32>
    %14 = tpu.matmul %11, %9, %cst_7 {dimension_numbers = #tpu.dot_dimension_numbers<[0], [0], [1], [1], [0, 1, 1, 1], [], []>} : vector<8x256xbf16>, vector<8x256xbf16>, vector<256x256xf32> -> vector<256x256xf32>
    %cst_8 = arith.constant dense<0xFF800000> : vector<256xf32>
    %15 = vector.multi_reduction <maximumf>, %14, %cst_8 [0] : vector<256x256xf32> to vector<256xf32>
    %16 = vector.shape_cast %15 : vector<256xf32> to vector<1x256xf32>
    %17 = vector.broadcast %16 : vector<1x256xf32> to vector<256x256xf32>
    %18 = arith.subf %14, %17 : vector<256x256xf32>
    %19 = arith.truncf %18 : vector<256x256xf32> to vector<256x256xbf16>
    %20 = math.exp %19 : vector<256x256xbf16>
    %cst_9 = arith.constant 1.000000e+00 : bf16
    %21 = vector.broadcast %cst_9 : bf16 to vector<1x256xbf16>
    %cst_10 = arith.constant dense<0.000000e+00> : vector<1x256xf32>
    %22 = tpu.matmul %21, %20, %cst_10 {dimension_numbers = #tpu.dot_dimension_numbers<[1], [0], [0], [1], [0, 0, 1, 1], [], []>} : vector<1x256xbf16>, vector<256x256xbf16>, vector<1x256xf32> -> vector<1x256xf32>
    %cst_11 = arith.constant dense<0.000000e+00> : vector<16x256xf32>
    %23 = tpu.matmul %13, %20, %cst_11 {dimension_numbers = #tpu.dot_dimension_numbers<[1], [0], [0], [1], [0, 0, 1, 1], [], []>} : vector<16x256xbf16>, vector<256x256xbf16>, vector<16x256xf32> -> vector<16x256xf32>
    %24 = tpu.reciprocal %22 {approx = true} : vector<1x256xf32> -> vector<1x256xf32>
    %25 = vector.broadcast %0 : f32 to vector<1x256xf32>
    %26 = arith.mulf %25, %24 : vector<1x256xf32>
    %27 = vector.broadcast %26 : vector<1x256xf32> to vector<16x256xf32>
    %28 = arith.mulf %23, %27 : vector<16x256xf32>
    %29 = arith.addf %28, %4 : vector<16x256xf32>
    %c0_12 = arith.constant 0 : index
    %c0_13 = arith.constant 0 : index
    %c0_14 = arith.constant 0 : index
    %30 = vector.load %arg5[%c0_12, %c0_13, %c0_14] : memref<2x16x256xf32, #tpu.memory_space<vmem>>, vector<1x16x256xf32>
    %31 = vector.shape_cast %30 : vector<1x16x256xf32> to vector<16x256xf32>
    %32 = vector.shape_cast %29 : vector<16x256xf32> to vector<1x16x256xf32>
    tpu.vector_store %arg5[%c0_12, %c0_13, %c0_14], %32 {strides = array<i32>} : memref<2x16x256xf32, #tpu.memory_space<vmem>>, vector<1x16x256xf32>,
    %c1 = arith.constant 1 : index
    %c0_15 = arith.constant 0 : index
    %c0_16 = arith.constant 0 : index
    %33 = vector.load %arg1[%c1, %c0_15, %c0_16] : memref<2x16x256xf32, #tpu.memory_space<vmem>>, vector<1x16x256xf32>
    %34 = vector.shape_cast %33 : vector<1x16x256xf32> to vector<16x256xf32>
    %cst_17 = arith.constant dense<0.000000e+00> : vector<32x256xf32>
    %35 = tpu.matmul %1, %34, %cst_17 {dimension_numbers = #tpu.dot_dimension_numbers<[1], [0], [0], [1], [0, 0, 1, 1], [], []>} : vector<32x16xf32>, vector<16x256xf32>, vector<32x256xf32> -> vector<32x256xf32>
    %36 = vector.broadcast %2 : vector<32x1xf32> to vector<32x256xf32>
    %37 = arith.addf %35, %36 : vector<32x256xf32>
    %38 = vector.extract_strided_slice %37 {offsets = [0, 0], sizes = [8, 256], strides = [1, 1]} : vector<32x256xf32> to vector<8x256xf32>
    %39 = arith.truncf %38 : vector<8x256xf32> to vector<8x256xbf16>
    %40 = vector.extract_strided_slice %37 {offsets = [8, 0], sizes = [8, 256], strides = [1, 1]} : vector<32x256xf32> to vector<8x256xf32>
    %41 = arith.truncf %40 : vector<8x256xf32> to vector<8x256xbf16>
    %42 = vector.extract_strided_slice %37 {offsets = [16, 0], sizes = [16, 256], strides = [1, 1]} : vector<32x256xf32> to vector<16x256xf32>
    %43 = arith.truncf %42 : vector<16x256xf32> to vector<16x256xbf16>
    %cst_18 = arith.constant dense<0.000000e+00> : vector<256x256xf32>
    %44 = tpu.matmul %41, %39, %cst_18 {dimension_numbers = #tpu.dot_dimension_numbers<[0], [0], [1], [1], [0, 1, 1, 1], [], []>} : vector<8x256xbf16>, vector<8x256xbf16>, vector<256x256xf32> -> vector<256x256xf32>
    %cst_19 = arith.constant dense<0xFF800000> : vector<256xf32>
    %45 = vector.multi_reduction <maximumf>, %44, %cst_19 [0] : vector<256x256xf32> to vector<256xf32>
    %46 = vector.shape_cast %45 : vector<256xf32> to vector<1x256xf32>
    %47 = vector.broadcast %46 : vector<1x256xf32> to vector<256x256xf32>
    %48 = arith.subf %44, %47 : vector<256x256xf32>
    %49 = arith.truncf %48 : vector<256x256xf32> to vector<256x256xbf16>
    %50 = math.exp %49 : vector<256x256xbf16>
    %cst_20 = arith.constant 1.000000e+00 : bf16
    %51 = vector.broadcast %cst_20 : bf16 to vector<1x256xbf16>
    %cst_21 = arith.constant dense<0.000000e+00> : vector<1x256xf32>
    %52 = tpu.matmul %51, %50, %cst_21 {dimension_numbers = #tpu.dot_dimension_numbers<[1], [0], [0], [1], [0, 0, 1, 1], [], []>} : vector<1x256xbf16>, vector<256x256xbf16>, vector<1x256xf32> -> vector<1x256xf32>
    %cst_22 = arith.constant dense<0.000000e+00> : vector<16x256xf32>
    %53 = tpu.matmul %43, %50, %cst_22 {dimension_numbers = #tpu.dot_dimension_numbers<[1], [0], [0], [1], [0, 0, 1, 1], [], []>} : vector<16x256xbf16>, vector<256x256xbf16>, vector<16x256xf32> -> vector<16x256xf32>
    %54 = tpu.reciprocal %52 {approx = true} : vector<1x256xf32> -> vector<1x256xf32>
    %55 = vector.broadcast %0 : f32 to vector<1x256xf32>
    %56 = arith.mulf %55, %54 : vector<1x256xf32>
    %57 = vector.broadcast %56 : vector<1x256xf32> to vector<16x256xf32>
    %58 = arith.mulf %53, %57 : vector<16x256xf32>
    %59 = arith.addf %58, %34 : vector<16x256xf32>
    %c1_23 = arith.constant 1 : index
    %c0_24 = arith.constant 0 : index
    %c0_25 = arith.constant 0 : index
    %60 = vector.load %arg5[%c1_23, %c0_24, %c0_25] : memref<2x16x256xf32, #tpu.memory_space<vmem>>, vector<1x16x256xf32>
    %61 = vector.shape_cast %60 : vector<1x16x256xf32> to vector<16x256xf32>
    %62 = vector.shape_cast %59 : vector<16x256xf32> to vector<1x16x256xf32>
    tpu.vector_store %arg5[%c1_23, %c0_24, %c0_25], %62 {strides = array<i32>} : memref<2x16x256xf32, #tpu.memory_space<vmem>>, vector<1x16x256xf32>,
    return
  }
  func.func @transform_0(%arg0: i32) -> (i32, i32, i32) {
    %c0_i32 = arith.constant 0 : i32
    %c0_i32_0 = arith.constant 0 : i32
    %c0_i32_1 = arith.constant 0 : i32
    return %arg0, %c0_i32, %c0_i32_0 : i32, i32, i32
  }
  func.func @transform_1(%arg0: i32) -> (i32, i32) {
    %c0_i32 = arith.constant 0 : i32
    %c0_i32_0 = arith.constant 0 : i32
    %c0_i32_1 = arith.constant 0 : i32
    return %c0_i32, %c0_i32_0 : i32, i32
  }
  func.func @transform_2(%arg0: i32) -> (i32, i32) {
    %c0_i32 = arith.constant 0 : i32
    %c0_i32_0 = arith.constant 0 : i32
    %c0_i32_1 = arith.constant 0 : i32
    return %c0_i32, %c0_i32_0 : i32, i32
  }
  func.func @transform_3(%arg0: i32) -> i32 {
    %c0_i32 = arith.constant 0 : i32
    %c0_i32_0 = arith.constant 0 : i32
    return %c0_i32 : i32
  }
  func.func @transform_4(%arg0: i32) -> (i32, i32, i32) {
    %c0_i32 = arith.constant 0 : i32
    %c0_i32_0 = arith.constant 0 : i32
    %c0_i32_1 = arith.constant 0 : i32
    return %arg0, %c0_i32, %c0_i32_0 : i32, i32, i32
  }
}

</mosaic_0001>

<bundles_post_ra>
// kernel: tpu_custom_call.1
= control target key start
LH: loop header
LB: loop body
LE: loop exit
PB: predicated region body
PF: predicated region fallthrough
CT: control target
= control target key end

     0   :  { %v1817_v5 = vmov 0.0   ;;  %v3056_v6 = vmov 0   ;;  %vm54_vm0 = vcmask 130048   ;;  %s3051_s0 = inlined_call_operand.vmem [shape: f32[2,16,256], index: 0, kind: input, shape index: {}]   ;;  %s3052_s1 = inlined_call_operand.vmem [shape: f32[32,16], index: 1, kind: input, shape index: {}]   ;;  %s3053_s2 = inlined_call_operand.vmem [shape: f32[32,1], index: 2, kind: input, shape index: {}]   ;;  %s3054_s3 = inlined_call_operand.<no memory space> [shape: f32[1], index: 3, kind: input, shape index: {}]   ;;  %s3055_s4 = inlined_call_operand.hbm [shape: f32[2,16,256], index: 4, kind: output, shape index: {}]  }
   0x1   :  { %v31_v0 = vld [vmem:[%s3051_s0 + $0x8] sm:$0xff]  ;;  %v33_v1 = vld [vmem:[%s3051_s0 + $0x18] sm:$0xff]  ;;  %v30_v2 = vld [vmem:[%s3051_s0] sm:$0xff]  ;;  %131 = vmatprep.mubr.f32.mxu0 %v1817_v5  ;;  %1648 = vset.pattern.permute.xlu0 %v3056_v6 }
   0x2   :  { %v1634_v3 = vpack.c.bf16 %v33_v1, %v31_v0  ;;  %v32_v4 = vld [vmem:[%s3051_s0 + $0x10] sm:$0xff]  ;;  %v27_v8 = vld [vmem:[%s3053_s2 + $0x8] sm:$0xff]  ;;  %282 = vmatprep.mubr.bf16.mxu1 %v3056_v6  ;;  %v1869_v9 = vld [vmem:[%s3052_s1] sm:$0xff] }
   0x3   :  { %v1636_v7 = vpack.c.bf16 %v32_v4, %v30_v2  ;;  %41 = vperm.xlu0 %1648, %v27_v8   ;;  %v26_v10 = vld [vmem:[%s3053_s2] sm:$0xff] }
   0x4   :  { %1635 = vmatprep.subr.bf16.mxu0 %v1634_v3 }
   0x5   :  { %1637 = vmatpush1.bf16.msra.mxu0 %v1636_v7 }
   0x6   :  { %10 = vsyncpa [#allocation4], 0  ;;  %v1880_v11 = vld [vmem:[%s3052_s1 + $0x8] sm:$0xff]  ;;  %v28_v12 = vld [vmem:[%s3053_s2 + $0x10] sm:$0xff]  ;;  %vm243_vm1 = vcmask 1043456   ;;  %vm194_vm2 = vcmask 64512  }
   0x7   :  { %36 = vperm.xlu0 %1648, %v26_v10   ;;  %v1891_v13 = vld [vmem:[%s3052_s1 + $0x10] sm:$0xff]  ;;  %v29_v14 = vld [vmem:[%s3053_s2 + $0x18] sm:$0xff]  ;;  %v1610_v42 = vld [vmem:[%s3051_s0 + $0x28] sm:$0xff]  ;;  %s1820_s30 = smov [#allocation3]  }
   0x8   :  { %1588 = vmatmul.mubr.msk.f32.vlgmr.msra.gmra.mrb[0].mxu0 %vm54_vm0, %v1869_v9  ;;  %v1902_v15 = vld [vmem:[%s3052_s1 + $0x18] sm:$0xff]  ;;  %v1609_v46 = vld [vmem:[%s3051_s0 + $0x20] sm:$0xff]  ;;  %v1611_v47 = vld [vmem:[%s3051_s0 + $0x30] sm:$0xff]  ;;  %s1577_s5 = sshll.u32 %s1820_s30, 4  ;;  %s1578_s5 = int_to_ptr.vmem [resolvable:$true] %s1577_s5 }
   0x9   :  { %137 = vmatprep.mubr.f32.mxu0 %v1817_v5  ;;  %v1612_v43 = vld [vmem:[%s3051_s0 + $0x38] sm:$0xff]  ;;  %v1640_v48 = vpack.c.bf16 %v1611_v47, %v1609_v46  ;;  %s1793_s12 = scalar_lea.vmem %s1578_s5, 1024  ;;  %p1798_p1 = scmp.lt.s32.totalorder %s1578_s5, %s1578_s5 }
   0xa   :  { %v1638_v44 = vpack.c.bf16 %v1612_v43, %v1610_v42  ;;  %p1794_p0 = scmp.ne.s32.totalorder %s1578_s5, %s1793_s12  ;;  %p1799_p2 = scmp.lt.s32.totalorder %s1793_s12, %s1793_s12 }
   0xb   :  { %46 = vperm.xlu0 %1648, %v28_v12  }
   0xc   :  { %1589 = vmatmul.mubr.msk.f32.gmra.mrb[2].mxu0 %vm54_vm0, %v1880_v11  ;;  %p1800_p3 = por %p1799_p2, %p1798_p1 }
   0xd   :  { %143 = vmatprep.mubr.f32.mxu0 %v1817_v5 }
   0xe   :  { %p1801_p4 = pnand %p1800_p3, %p1794_p0 }
   0xf   :  { %51 = vperm.xlu0 %1648, %v29_v14  }
  0x10   :  { %1590 = vmatmul.mubr.msk.f32.gmra.mrb[4].mxu0 %vm54_vm0, %v1891_v13 }
  0x11   :  { %149 = vmatprep.mubr.f32.mxu0 %v1817_v5 }
  0x14   :  { %1591 = vmatmul.mubr.msk.f32.gmra.mrb[6].mxu0 %vm54_vm0, %v1902_v15 }
  0x82   :  { %v1906_v16 = vpop.permute.xlu0 %41 }
  0x86   :  { %v1908_v17 = vpop.permute.xlu0 %36 }
  0x87   :  { %3130 = vst [vmem:[#allocation6_spill] sm:$0xff] %v1908_v17 }
  0x8a   :  { %v1914_v28 = vpop.permute.xlu0 %46 }
  0x8b   :  { %3131 = vst [vmem:[#allocation7_spill] sm:$0xff] %v1914_v28 }
  0x8e   :  { %v1917_v32 = vpop.permute.xlu0 %51 }
  0x8f   :  { %3132 = vst [vmem:[#allocation8_spill] sm:$0xff] %v1917_v32 }
  0xdb   :  { %v133_v18 = vpop.f32.mrb[0].mxu0 }
  0xdc   :  { %v134_v19 = vadd.f32 %v133_v18, %v1908_v17  ;;  %v135_v20 = vpop.f32.mrb[1].mxu0 }
  0xdd   :  { %v136_v21 = vadd.f32 %v135_v20, %v1908_v17 }
  0xde   :  { %v156_v22 = vpack.c.bf16 %v134_v19, %v134_v19 }
  0xdf   :  { %v157_v23 = vpack.c.bf16 %v136_v21, %v136_v21  ;;  %v139_v24 = vpop.f32.mrb[2].mxu0 }
  0xe0   :  { %v141_v25 = vpop.f32.mrb[3].mxu0  ;;  %v245_v26 = vsel %vm243_vm1, %v156_v22, 0  ;;  %v140_v27 = vadd.f32 %v139_v24, %v1906_v16 }
  0xe1   :  { %1592 = vmatprep.subr.msk.bf16.mxu1 %vm243_vm1, %v157_v23  ;;  %v142_v41 = vadd.f32 %v141_v25, %v1906_v16 }
  0xe2   :  { %251 = vmatpush1.bf16.msra.mxu1 %v245_v26  ;;  %v158_v29 = vpack.c.bf16 %v140_v27, %v140_v27 }
  0xe3   :  { %v145_v30 = vpop.f32.mrb[4].mxu0  ;;  %1639 = vmatprep.subr.bf16.mxu1 %v1638_v44  ;;  %v159_v45 = vpack.c.bf16 %v142_v41, %v142_v41 }
  0xe4   :  { %v147_v31 = vpop.f32.mrb[5].mxu0  ;;  %162 = vxpose.xlu1.c.b16.start.end [1/1] (short) %v158_v29, 128  ;;  %v1920_v34 = vadd.f32 %v145_v30, %v1914_v28 }
  0xe5   :  { %v1926_v37 = vadd.f32 %v147_v31, %v1914_v28 }
  0xe6   :  { %3133 = vst [vmem:[#allocation9_spill] sm:$0xff] %v1920_v34 }
  0xe7   :  { %v151_v33 = vpop.f32.mrb[6].mxu0  ;;  %3135 = vst [vmem:[#allocation11_spill] sm:$0xff] %v1926_v37 }
  0xe8   :  { %v1923_v35 = vadd.f32 %v151_v33, %v1917_v32  ;;  %v153_v36 = vpop.f32.mrb[7].mxu0 }
  0xe9   :  { %v1929_v38 = vadd.f32 %v153_v36, %v1917_v32 }
  0xea   :  { %3134 = vst [vmem:[#allocation10_spill] sm:$0xff] %v1923_v35 }
  0xeb   :  { %3136 = vst [vmem:[#allocation12_spill] sm:$0xff] %v1929_v38 }
 0x101   :  { %178 = vxpose.xlu1.c.b16.start.end [1/1] (short) %v159_v45, 128 }
 0x14a   :  { %v170_v49 = vpop.trf.xlu1 }
 0x14b   :  { %1593 = vmatmul.mubr.msk.bf16.vlgmr.msra.gmra.mrb[0].mxu1 %vm194_vm2, %v170_v49 }
 0x14c   :  { %292 = vmatprep.mubr.bf16.mxu1 %v3056_v6  ;;  %1641 = vmatpush1.bf16.msra.mxu1 %v1640_v48 }
 0x14e   :  { %v171_v50 = vpop.trf.xlu1 }
 0x152   :  { %v172_v51 = vpop.trf.xlu1 }
 0x153   :  { %1594 = vmatmul.mubr.msk.bf16.gmra.mrb[4].mxu1 %vm194_vm2, %v171_v50 }
 0x154   :  { %302 = vmatprep.mubr.bf16.mxu1 %v3056_v6 }
 0x156   :  { %v173_v52 = vpop.trf.xlu1 }
 0x15a   :  { %v174_v53 = vpop.trf.xlu1 }
 0x15b   :  { %1595 = vmatmul.mubr.msk.bf16.gmra.mrb[8].mxu1 %vm194_vm2, %v172_v51 }
 0x15c   :  { %312 = vmatprep.mubr.bf16.mxu1 %v3056_v6 }
 0x15e   :  { %v175_v54 = vpop.trf.xlu1 }
 0x162   :  { %v176_v55 = vpop.trf.xlu1 }
 0x163   :  { %1596 = vmatmul.mubr.msk.bf16.gmra.mrb[12].mxu1 %vm194_vm2, %v173_v52 }
 0x164   :  { %322 = vmatprep.mubr.bf16.mxu1 %v3056_v6 }
 0x166   :  { %v177_v56 = vpop.trf.xlu1 }
 0x16a   :  { %v186_v57 = vpop.trf.xlu1 }
 0x16b   :  { %1597 = vmatmul.mubr.msk.bf16.gmra.mrb[16].mxu1 %vm194_vm2, %v174_v53 }
 0x16c   :  { %332 = vmatprep.mubr.bf16.mxu1 %v3056_v6 }
 0x16e   :  { %v187_v58 = vpop.trf.xlu1 }
 0x172   :  { %v188_v59 = vpop.trf.xlu1 }
 0x173   :  { %1598 = vmatmul.mubr.msk.bf16.gmra.mrb[20].mxu1 %vm194_vm2, %v175_v54 }
 0x174   :  { %342 = vmatprep.mubr.bf16.mxu1 %v3056_v6 }
 0x176   :  { %v189_v60 = vpop.trf.xlu1 }
 0x17a   :  { %v190_v61 = vpop.trf.xlu1 }
 0x17b   :  { %1599 = vmatmul.mubr.msk.bf16.gmra.mrb[24].mxu1 %vm194_vm2, %v176_v55 }
 0x17c   :  { %352 = vmatprep.mubr.bf16.mxu1 %v3056_v6 }
 0x17e   :  { %v191_v62 = vpop.trf.xlu1 }
 0x182   :  { %v192_v63 = vpop.trf.xlu1 }
 0x183   :  { %1600 = vmatmul.mubr.msk.bf16.gmra.mrb[28].mxu1 %vm194_vm2, %v177_v56 }
 0x184   :  { %362 = vmatprep.mubr.bf16.mxu1 %v3056_v6 }
 0x186   :  { %v193_v0 = vpop.trf.xlu1 }
 0x18b   :  { %1601 = vmatmul.mubr.msk.bf16.gmra.mrb[32].mxu1 %vm194_vm2, %v186_v57 }
 0x18c   :  { %372 = vmatprep.mubr.bf16.mxu1 %v3056_v6 }
 0x193   :  { %1602 = vmatmul.mubr.msk.bf16.gmra.mrb[36].mxu1 %vm194_vm2, %v187_v58 }
 0x194   :  { %382 = vmatprep.mubr.bf16.mxu1 %v3056_v6 }
 0x19b   :  { %1603 = vmatmul.mubr.msk.bf16.gmra.mrb[40].mxu1 %vm194_vm2, %v188_v59 }
 0x19c   :  { %392 = vmatprep.mubr.bf16.mxu1 %v3056_v6 }
 0x1a3   :  { %1604 = vmatmul.mubr.msk.bf16.gmra.mrb[44].mxu1 %vm194_vm2, %v189_v60 }
 0x1a4   :  { %402 = vmatprep.mubr.bf16.mxu1 %v3056_v6 }
 0x1ab   :  { %1605 = vmatmul.mubr.msk.bf16.gmra.mrb[48].mxu1 %vm194_vm2, %v190_v61 }
 0x1ac   :  { %412 = vmatprep.mubr.bf16.mxu1 %v3056_v6 }
 0x1b3   :  { %1606 = vmatmul.mubr.msk.bf16.gmra.mrb[52].mxu1 %vm194_vm2, %v191_v62 }
 0x1b4   :  { %422 = vmatprep.mubr.bf16.mxu1 %v3056_v6 }
 0x1bb   :  { %1607 = vmatmul.mubr.msk.bf16.gmra.mrb[56].mxu1 %vm194_vm2, %v192_v63 }
 0x1bc   :  { %432 = vmatprep.mubr.bf16.mxu1 %v3056_v6 }
 0x1c3   :  { %1608 = vmatmul.mubr.msk.bf16.gmra.mrb[60].mxu1 %vm194_vm2, %v193_v0 }
 0x1c4   :  { %887 = vmatprep.mubr.f32.mxu1 %v1817_v5 }
 0x1cb   :  { %1613 = vmatmul.mubr.msk.f32.vlgmr.msra.gmra.mrb[64].mxu1 %vm54_vm0, %v1869_v9 }
 0x1cc   :  { %893 = vmatprep.mubr.f32.mxu1 %v1817_v5 }
 0x1cf   :  { %1614 = vmatmul.mubr.msk.f32.gmra.mrb[66].mxu1 %vm54_vm0, %v1880_v11 }
 0x1d0   :  { %899 = vmatprep.mubr.f32.mxu1 %v1817_v5 }
 0x1d3   :  { %1615 = vmatmul.mubr.msk.f32.gmra.mrb[68].mxu1 %vm54_vm0, %v1891_v13 }
 0x1d4   :  { %905 = vmatprep.mubr.f32.mxu1 %v1817_v5 }
 0x1d7   :  { %1616 = vmatmul.mubr.msk.f32.gmra.mrb[70].mxu1 %vm54_vm0, %v1902_v15 }
 0x21e   :  { %v1991_v1 = vpop.f32.mrb[0].mxu1 }
 0x21f   :  { %v1993_v2 = vpop.f32.mrb[1].mxu1 }
 0x220   :  { %v1995_v3 = vpop.f32.mrb[2].mxu1 }
 0x221   :  { %3137 = vst [vmem:[#allocation13_spill] sm:$0xff] %v1995_v3  ;;  %v1997_v4 = vpop.f32.mrb[3].mxu1 }
 0x226   :  { %v1999_v7 = vpop.f32.mrb[4].mxu1 }
 0x227   :  { %3138 = vst [vmem:[#allocation14_spill] sm:$0xff] %v1999_v7  ;;  %v443_v8 = vmax.f32 %v1991_v1, %v1999_v7  ;;  %v2003_v9 = vpop.f32.mrb[5].mxu1 }
 0x228   :  { %v480_v5 = vmax.f32 %v1993_v2, %v2003_v9  ;;  %v2007_v10 = vpop.f32.mrb[6].mxu1 }
 0x229   :  { %3139 = vst [vmem:[#allocation15_spill] sm:$0xff] %v2007_v10  ;;  %v444_v11 = vmax.f32 %v1995_v3, %v2007_v10  ;;  %v2011_v12 = vpop.f32.mrb[7].mxu1 }
 0x22a   :  { %v481_v13 = vmax.f32 %v1997_v4, %v2011_v12 }
 0x22e   :  { %v2015_v14 = vpop.f32.mrb[8].mxu1 }
 0x22f   :  { %3140 = vst [vmem:[#allocation16_spill] sm:$0xff] %v2015_v14  ;;  %v445_v15 = vmax.f32 %v443_v8, %v2015_v14  ;;  %v2018_v18 = vpop.f32.mrb[9].mxu1 }
 0x230   :  { %v482_v19 = vmax.f32 %v480_v5, %v2018_v18  ;;  %v2021_v20 = vpop.f32.mrb[10].mxu1 }
 0x231   :  { %3141 = vst [vmem:[#allocation17_spill] sm:$0xff] %v2021_v20  ;;  %v446_v21 = vmax.f32 %v444_v11, %v2021_v20  ;;  %v2024_v22 = vpop.f32.mrb[11].mxu1 }
 0x232   :  { %v483_v23 = vmax.f32 %v481_v13, %v2024_v22 }
 0x236   :  { %v2027_v24 = vpop.f32.mrb[12].mxu1 }
 0x237   :  { %v447_v25 = vmax.f32 %v445_v15, %v2027_v24  ;;  %v2030_v26 = vpop.f32.mrb[13].mxu1 }
 0x238   :  { %v484_v27 = vmax.f32 %v482_v19, %v2030_v26  ;;  %v2033_v29 = vpop.f32.mrb[14].mxu1 }
 0x239   :  { %v448_v30 = vmax.f32 %v446_v21, %v2033_v29  ;;  %v2036_v31 = vpop.f32.mrb[15].mxu1 }
 0x23a   :  { %v485_v33 = vmax.f32 %v483_v23, %v2036_v31 }
 0x23e   :  { %v2039_v36 = vpop.f32.mrb[16].mxu1 }
 0x23f   :  { %v449_v41 = vmax.f32 %v447_v25, %v2039_v36  ;;  %v2042_v42 = vpop.f32.mrb[17].mxu1 }
 0x240   :  { %v486_v43 = vmax.f32 %v484_v27, %v2042_v42  ;;  %v2045_v44 = vpop.f32.mrb[18].mxu1 }
 0x241   :  { %v450_v45 = vmax.f32 %v448_v30, %v2045_v44  ;;  %v2048_v46 = vpop.f32.mrb[19].mxu1 }
 0x242   :  { %3142 = vst [vmem:[#allocation18_spill] sm:$0xff] %v2048_v46  ;;  %v487_v47 = vmax.f32 %v485_v33, %v2048_v46 }
 0x246   :  { %v2051_v48 = vpop.f32.mrb[20].mxu1 }
 0x247   :  { %v451_v49 = vmax.f32 %v449_v41, %v2051_v48  ;;  %v2054_v50 = vpop.f32.mrb[21].mxu1 }
 0x248   :  { %3143 = vst [vmem:[#allocation19_spill] sm:$0xff] %v2054_v50  ;;  %v488_v51 = vmax.f32 %v486_v43, %v2054_v50  ;;  %v2057_v52 = vpop.f32.mrb[22].mxu1 }
 0x249   :  { %v452_v53 = vmax.f32 %v450_v45, %v2057_v52  ;;  %v2060_v54 = vpop.f32.mrb[23].mxu1 }
 0x24a   :  { %3144 = vst [vmem:[#allocation20_spill] sm:$0xff] %v2060_v54  ;;  %v489_v55 = vmax.f32 %v487_v47, %v2060_v54 }
 0x24e   :  { %v2063_v56 = vpop.f32.mrb[24].mxu1 }
 0x24f   :  { %v453_v57 = vmax.f32 %v451_v49, %v2063_v56  ;;  %v2066_v58 = vpop.f32.mrb[25].mxu1 }
 0x250   :  { %3145 = vst [vmem:[#allocation21_spill] sm:$0xff] %v2066_v58  ;;  %v490_v59 = vmax.f32 %v488_v51, %v2066_v58  ;;  %v2069_v60 = vpop.f32.mrb[26].mxu1 }
 0x251   :  { %v454_v61 = vmax.f32 %v452_v53, %v2069_v60  ;;  %v2072_v62 = vpop.f32.mrb[27].mxu1 }
 0x252   :  { %3146 = vst [vmem:[#allocation22_spill] sm:$0xff] %v2072_v62  ;;  %v491_v63 = vmax.f32 %v489_v55, %v2072_v62  ;;  %v3089_v62 = vmov 1065369472  }
 0x253   :  { %741 = vmatprep.mubr.bf16.mxu0 %v3089_v62  ;;  %1495 = vmatprep.mubr.bf16.mxu1 %v3089_v62 }
 0x256   :  { %v2075_v0 = vpop.f32.mrb[28].mxu1 }
 0x257   :  { %v455_v8 = vmax.f32 %v453_v57, %v2075_v0  ;;  %v2078_v5 = vpop.f32.mrb[29].mxu1 }
 0x258   :  { %3147 = vst [vmem:[#allocation23_spill] sm:$0xff] %v2078_v5  ;;  %v492_v11 = vmax.f32 %v490_v59, %v2078_v5  ;;  %v2081_v13 = vpop.f32.mrb[30].mxu1 }
 0x259   :  { %v456_v15 = vmax.f32 %v454_v61, %v2081_v13  ;;  %v2084_v19 = vpop.f32.mrb[31].mxu1 }
 0x25a   :  { %3148 = vst [vmem:[#allocation24_spill] sm:$0xff] %v2084_v19  ;;  %v493_v21 = vmax.f32 %v491_v63, %v2084_v19 }
 0x25e   :  { %v2087_v23 = vpop.f32.mrb[32].mxu1 }
 0x25f   :  { %v457_v25 = vmax.f32 %v455_v8, %v2087_v23  ;;  %v2090_v27 = vpop.f32.mrb[33].mxu1 }
 0x260   :  { %3149 = vst [vmem:[#allocation25_spill] sm:$0xff] %v2090_v27  ;;  %v494_v30 = vmax.f32 %v492_v11, %v2090_v27  ;;  %v2093_v33 = vpop.f32.mrb[34].mxu1 }
 0x261   :  { %v458_v41 = vmax.f32 %v456_v15, %v2093_v33  ;;  %v2096_v43 = vpop.f32.mrb[35].mxu1 }
 0x262   :  { %3150 = vst [vmem:[#allocation26_spill] sm:$0xff] %v2096_v43  ;;  %v495_v45 = vmax.f32 %v493_v21, %v2096_v43 }
 0x266   :  { %v2099_v47 = vpop.f32.mrb[36].mxu1 }
 0x267   :  { %v459_v49 = vmax.f32 %v457_v25, %v2099_v47  ;;  %v2102_v51 = vpop.f32.mrb[37].mxu1 }
 0x268   :  { %3151 = vst [vmem:[#allocation27_spill] sm:$0xff] %v2102_v51  ;;  %v496_v53 = vmax.f32 %v494_v30, %v2102_v51  ;;  %v2105_v55 = vpop.f32.mrb[38].mxu1 }
 0x269   :  { %v460_v57 = vmax.f32 %v458_v41, %v2105_v55  ;;  %v2108_v59 = vpop.f32.mrb[39].mxu1 }
 0x26a   :  { %3152 = vst [vmem:[#allocation28_spill] sm:$0xff] %v2108_v59  ;;  %v497_v61 = vmax.f32 %v495_v45, %v2108_v59 }
 0x26e   :  { %v2111_v63 = vpop.f32.mrb[40].mxu1 }
 0x26f   :  { %v461_v8 = vmax.f32 %v459_v49, %v2111_v63  ;;  %v2114_v11 = vpop.f32.mrb[41].mxu1 }
 0x270   :  { %3153 = vst [vmem:[#allocation29_spill] sm:$0xff] %v2114_v11  ;;  %v498_v15 = vmax.f32 %v496_v53, %v2114_v11  ;;  %v2117_v21 = vpop.f32.mrb[42].mxu1 }
 0x271   :  { %v462_v25 = vmax.f32 %v460_v57, %v2117_v21  ;;  %v2120_v30 = vpop.f32.mrb[43].mxu1 }
 0x272   :  { %3154 = vst [vmem:[#allocation30_spill] sm:$0xff] %v2120_v30  ;;  %v499_v41 = vmax.f32 %v497_v61, %v2120_v30 }
 0x276   :  { %v2123_v6 = vpop.f32.mrb[44].mxu1 }
 0x277   :  { %v463_v45 = vmax.f32 %v461_v8, %v2123_v6  ;;  %v2126_v39 = vpop.f32.mrb[45].mxu1 }
 0x278   :  { %3155 = vst [vmem:[#allocation31_spill] sm:$0xff] %v2126_v39  ;;  %v500_v49 = vmax.f32 %v498_v15, %v2126_v39  ;;  %v2129_v40 = vpop.f32.mrb[46].mxu1 }
 0x279   :  { %v464_v53 = vmax.f32 %v462_v25, %v2129_v40  ;;  %v2132_v34 = vpop.f32.mrb[47].mxu1 }
 0x27a   :  { %3156 = vst [vmem:[#allocation32_spill] sm:$0xff] %v2132_v34  ;;  %v501_v57 = vmax.f32 %v499_v41, %v2132_v34 }
 0x27e   :  { %v2135_v35 = vpop.f32.mrb[48].mxu1 }
 0x27f   :  { %v465_v61 = vmax.f32 %v463_v45, %v2135_v35  ;;  %v2138_v17 = vpop.f32.mrb[49].mxu1 }
 0x280   :  { %3157 = vst [vmem:[#allocation33_spill] sm:$0xff] %v2138_v17  ;;  %v502_v8 = vmax.f32 %v500_v49, %v2138_v17  ;;  %v2141_v37 = vpop.f32.mrb[50].mxu1 }
 0x281   :  { %v466_v15 = vmax.f32 %v464_v53, %v2141_v37  ;;  %v2144_v38 = vpop.f32.mrb[51].mxu1 }
 0x282   :  { %3158 = vst [vmem:[#allocation34_spill] sm:$0xff] %v2144_v38  ;;  %v503_v25 = vmax.f32 %v501_v57, %v2144_v38 }
 0x286   :  { %v2147_v28 = vpop.f32.mrb[52].mxu1 }
 0x287   :  { %v467_v41 = vmax.f32 %v465_v61, %v2147_v28  ;;  %v2150_v32 = vpop.f32.mrb[53].mxu1 }
 0x288   :  { %3159 = vst [vmem:[#allocation35_spill] sm:$0xff] %v2150_v32  ;;  %v504_v45 = vmax.f32 %v502_v8, %v2150_v32  ;;  %v2153_v34 = vpop.f32.mrb[54].mxu1 }
 0x289   :  { %v468_v49 = vmax.f32 %v466_v15, %v2153_v34  ;;  %v2156_v17 = vpop.f32.mrb[55].mxu1 }
 0x28a   :  { %3160 = vst [vmem:[#allocation36_spill] sm:$0xff] %v2156_v17  ;;  %v505_v53 = vmax.f32 %v503_v25, %v2156_v17 }
 0x28e   :  { %v2159_v39 = vpop.f32.mrb[56].mxu1 }
 0x28f   :  { %v469_v57 = vmax.f32 %v467_v41, %v2159_v39  ;;  %v2162_v38 = vpop.f32.mrb[57].mxu1 }
 0x290   :  { %3161 = vst [vmem:[#allocation37_spill] sm:$0xff] %v2162_v38  ;;  %v506_v61 = vmax.f32 %v504_v45, %v2162_v38  ;;  %v2165_v30 = vpop.f32.mrb[58].mxu1 }
 0x291   :  { %v470_v8 = vmax.f32 %v468_v49, %v2165_v30  ;;  %v2168_v32 = vpop.f32.mrb[59].mxu1 }
 0x292   :  { %3162 = vst [vmem:[#allocation38_spill] sm:$0xff] %v2168_v32  ;;  %v507_v15 = vmax.f32 %v505_v53, %v2168_v32 }
 0x296   :  { %v434_v11 = vpop.f32.mrb[60].mxu1 }
 0x297   :  { %v471_v59 = vmax.f32 %v469_v57, %v434_v11  ;;  %v2171_v51 = vpop.f32.mrb[61].mxu1 }
 0x298   :  { %v508_v25 = vmax.f32 %v506_v61, %v2171_v51  ;;  %v438_v17 = vpop.f32.mrb[62].mxu1 }
 0x299   :  { %v472_v41 = vmax.f32 %v470_v8, %v438_v17  ;;  %v2174_v43 = vpop.f32.mrb[63].mxu1 }
 0x29a   :  { %v509_v45 = vmax.f32 %v507_v15, %v2174_v43 }
 0x29b   :  { %v473_v38 = vmax.f32 %v471_v59, %v472_v41 }
 0x29c   :  { %v510_v27 = vmax.f32 %v508_v25, %v509_v45 }
 0x29d   :  { %v474_v19 = vrot.slane %v473_v38, 4 }
 0x29e   :  { %v511_v49 = vrot.slane %v510_v27, 4  ;;  %v2177_v5 = vpop.f32.mrb[64].mxu1 }
 0x29f   :  { %3163 = vst [vmem:[#allocation39_spill] sm:$0xff] %v2177_v5  ;;  %v475_v53 = vmax.f32 %v473_v38, %v474_v19  ;;  %v2181_v57 = vpop.f32.mrb[65].mxu1 }
 0x2a0   :  { %3164 = vst [vmem:[#allocation40_spill] sm:$0xff] %v2181_v57  ;;  %v512_v61 = vmax.f32 %v510_v27, %v511_v49 }
 0x2a1   :  { %v476_v8 = vrot.slane %v475_v53, 2 }
 0x2a2   :  { %v513_v32 = vrot.slane %v512_v61, 2  ;;  %v895_v58 = vpop.f32.mrb[66].mxu1 }
 0x2a3   :  { %v477_v54 = vmax.f32 %v475_v53, %v476_v8  ;;  %v896_v59 = vadd.f32 %v895_v58, %v1906_v16  ;;  %v897_v15 = vpop.f32.mrb[67].mxu1 }
 0x2a4   :  { %v514_v25 = vmax.f32 %v512_v61, %v513_v32  ;;  %v898_v41 = vadd.f32 %v897_v15, %v1906_v16 }
 0x2a5   :  { %v478_v45 = vrot.slane %v477_v54, 1  ;;  %v914_v5 = vpack.c.bf16 %v896_v59, %v896_v59 }
 0x2a6   :  { %v915_v50 = vpack.c.bf16 %v898_v41, %v898_v41  ;;  %v2185_v46 = vpop.f32.mrb[68].mxu1  ;;  %v515_v19 = vrot.slane %v514_v25, 1 }
 0x2a7   :  { %3165 = vst [vmem:[#allocation41_spill] sm:$0xff] %v2185_v46  ;;  %v2187_v62 = vmax.f32 %v477_v54, %v478_v45  ;;  %v2189_v38 = vpop.f32.mrb[69].mxu1  ;;  %918 = vxpose.xlu0.c.b16.start.end [1/1] (short) %v914_v5, 128  ;;  %v3174_v5 = vld [vmem:[#allocation21_spill] sm:$0xff] }
 0x2a8   :  { %3166 = vst [vmem:[#allocation42_spill] sm:$0xff] %v2189_v38  ;;  %934 = vxpose.xlu1.c.b16.start.end [1/1] (short) %v915_v50, 128  ;;  %v3173_v50 = vld [vmem:[#allocation20_spill] sm:$0xff] }
 0x2a9   :  { %v577_v27 = vsub.f32 %v434_v11, %v2187_v62  ;;  %v579_v58 = vsub.f32 %v438_v17, %v2187_v62  ;;  %v529_v53 = vsub.f32 %v2027_v24, %v2187_v62  ;;  %v531_v61 = vsub.f32 %v2033_v29, %v2187_v62 }
 0x2aa   :  { %v2205_v11 = vpop.f32.mrb[70].mxu1  ;;  %v533_v8 = vsub.f32 %v2039_v36, %v2187_v62  ;;  %v535_v15 = vsub.f32 %v2045_v44, %v2187_v62  ;;  %v537_v41 = vsub.f32 %v2051_v48, %v2187_v62  ;;  %v539_v45 = vsub.f32 %v2057_v52, %v2187_v62 }
 0x2ab   :  { %3167 = vst [vmem:[#allocation43_spill] sm:$0xff] %v2205_v11  ;;  %v2207_v17 = vpack.c.bf16 %v579_v58, %v577_v27  ;;  %v2215_v59 = vpop.f32.mrb[71].mxu1  ;;  %v541_v24 = vsub.f32 %v2063_v56, %v2187_v62  ;;  %v543_v29 = vsub.f32 %v2069_v60, %v2187_v62  ;;  %v545_v36 = vsub.f32 %v2075_v0, %v2187_v62 }
 0x2ac   :  { %3169 = vst [vmem:[#allocation45_spill] sm:$0xff] %v2215_v59  ;;  %v547_v27 = vsub.f32 %v2081_v13, %v2187_v62  ;;  %v2231_v58 = vmax.f32 %v514_v25, %v515_v19  ;;  %v549_v44 = vsub.f32 %v2087_v23, %v2187_v62  ;;  %v551_v48 = vsub.f32 %v2093_v33, %v2187_v62  ;;  %v3172_v19 = vld [vmem:[#allocation19_spill] sm:$0xff] }
 0x2ad   :  { %3168 = vst [vmem:[#allocation44_spill] sm:$0xff] %v2207_v17  ;;  %v553_v52 = vsub.f32 %v2099_v47, %v2187_v62  ;;  %v555_v56 = vsub.f32 %v2105_v55, %v2187_v62  ;;  %v557_v60 = vsub.f32 %v2111_v63, %v2187_v62  ;;  %v559_v0 = vsub.f32 %v2117_v21, %v2187_v62 }
 0x2ae   :  { %v561_v13 = vsub.f32 %v2123_v6, %v2187_v62  ;;  %v563_v23 = vsub.f32 %v2129_v40, %v2187_v62  ;;  %v565_v33 = vsub.f32 %v2135_v35, %v2187_v62  ;;  %v567_v47 = vsub.f32 %v2141_v37, %v2187_v62 }
 0x2af   :  { %v569_v55 = vsub.f32 %v2147_v28, %v2187_v62  ;;  %v571_v63 = vsub.f32 %v2153_v34, %v2187_v62  ;;  %v573_v21 = vsub.f32 %v2159_v39, %v2187_v62  ;;  %v575_v6 = vsub.f32 %v2165_v30, %v2187_v62 }
 0x2b0   :  { %v578_v40 = vsub.f32 %v2171_v51, %v2231_v58  ;;  %v580_v35 = vsub.f32 %v2174_v43, %v2231_v58  ;;  %v518_v37 = vsub.f32 %v1993_v2, %v2231_v58  ;;  %v520_v28 = vsub.f32 %v1997_v4, %v2231_v58 }
 0x2b1   :  { %v522_v34 = vsub.f32 %v2003_v9, %v2231_v58  ;;  %v524_v39 = vsub.f32 %v2011_v12, %v2231_v58  ;;  %v526_v30 = vsub.f32 %v2018_v18, %v2231_v58  ;;  %v528_v51 = vsub.f32 %v2024_v22, %v2231_v58  ;;  %v3171_v9 = vld [vmem:[#allocation18_spill] sm:$0xff] }
 0x2b2   :  { %v530_v43 = vsub.f32 %v2030_v26, %v2231_v58  ;;  %v2279_v25 = vpack.c.bf16 %v580_v35, %v578_v40  ;;  %v532_v2 = vsub.f32 %v2036_v31, %v2231_v58  ;;  %v534_v4 = vsub.f32 %v2042_v42, %v2231_v58  ;;  %v3175_v40 = vld [vmem:[#allocation22_spill] sm:$0xff]  ;;  %v3176_v31 = vld [vmem:[#allocation23_spill] sm:$0xff]  ;;  %v3177_v42 = vld [vmem:[#allocation24_spill] sm:$0xff] }
 0x2b3   :  { %v536_v12 = vsub.f32 %v3171_v9, %v2231_v58  ;;  %v538_v18 = vsub.f32 %v3172_v19, %v2231_v58  ;;  %v540_v22 = vsub.f32 %v3173_v50, %v2231_v58  ;;  %v542_v26 = vsub.f32 %v3174_v5, %v2231_v58  ;;  %v3178_v9 = vld [vmem:[#allocation25_spill] sm:$0xff]  ;;  %v3179_v19 = vld [vmem:[#allocation26_spill] sm:$0xff]  ;;  %v3180_v50 = vld [vmem:[#allocation27_spill] sm:$0xff] }
 0x2b4   :  { %3170 = vst [vmem:[#allocation46_spill] sm:$0xff] %v2279_v25  ;;  %v544_v35 = vsub.f32 %v3175_v40, %v2231_v58  ;;  %v546_v54 = vsub.f32 %v3176_v31, %v2231_v58  ;;  %v548_v49 = vsub.f32 %v3177_v42, %v2231_v58  ;;  %v550_v16 = vsub.f32 %v3178_v9, %v2231_v58  ;;  %v3181_v5 = vld [vmem:[#allocation28_spill] sm:$0xff]  ;;  %v3182_v40 = vld [vmem:[#allocation29_spill] sm:$0xff]  ;;  %v3183_v31 = vld [vmem:[#allocation30_spill] sm:$0xff] }
 0x2b5   :  { %v552_v32 = vsub.f32 %v3179_v19, %v2231_v58  ;;  %v554_v57 = vsub.f32 %v3180_v50, %v2231_v58  ;;  %v556_v17 = vsub.f32 %v3181_v5, %v2231_v58  ;;  %v558_v25 = vsub.f32 %v3182_v40, %v2231_v58  ;;  %v3184_v42 = vld [vmem:[#allocation31_spill] sm:$0xff]  ;;  %v3185_v9 = vld [vmem:[#allocation32_spill] sm:$0xff]  ;;  %v3186_v19 = vld [vmem:[#allocation33_spill] sm:$0xff] }
 0x2b6   :  { %v560_v38 = vsub.f32 %v3183_v31, %v2231_v58  ;;  %v562_v46 = vsub.f32 %v3184_v42, %v2231_v58  ;;  %v564_v59 = vsub.f32 %v3185_v9, %v2231_v58  ;;  %v566_v11 = vsub.f32 %v3186_v19, %v2231_v58  ;;  %v3187_v50 = vld [vmem:[#allocation34_spill] sm:$0xff]  ;;  %v3188_v5 = vld [vmem:[#allocation35_spill] sm:$0xff]  ;;  %v3189_v40 = vld [vmem:[#allocation36_spill] sm:$0xff] }
 0x2b7   :  { %v568_v20 = vsub.f32 %v3187_v50, %v2231_v58  ;;  %v570_v14 = vsub.f32 %v3188_v5, %v2231_v58  ;;  %v572_v10 = vsub.f32 %v3189_v40, %v2231_v58  ;;  %v3190_v31 = vld [vmem:[#allocation37_spill] sm:$0xff]  ;;  %v3191_v42 = vld [vmem:[#allocation38_spill] sm:$0xff]  ;;  %v3192_v9 = vsub.f32 %v1991_v1, %v2187_v62 }
 0x2b8   :  { %v574_v7 = vsub.f32 %v3190_v31, %v2231_v58  ;;  %v576_v3 = vsub.f32 %v3191_v42, %v2231_v58  ;;  %v3193_v19 = vld [vmem:[#allocation13_spill] sm:$0xff]  ;;  %v3195_v40 = vld [vmem:[#allocation14_spill] sm:$0xff]  ;;  %v3197_v42 = vld [vmem:[#allocation15_spill] sm:$0xff] }
 0x2b9   :  { %v3194_v50 = vsub.f32 %v3193_v19, %v2187_v62  ;;  %v3196_v31 = vsub.f32 %v3195_v40, %v2187_v62  ;;  %v3198_v58 = vsub.f32 %v3197_v42, %v2187_v62  ;;  %v3199_v19 = vld [vmem:[#allocation16_spill] sm:$0xff] }
 0x2bb   :  { %v581_v5 = vpack.c.bf16 %v3194_v50, %v3192_v9  ;;  %v583_v1 = vpack.c.bf16 %v3198_v58, %v3196_v31  ;;  %v3200_v9 = vsub.f32 %v3199_v19, %v2187_v62  ;;  %v3201_v50 = vld [vmem:[#allocation17_spill] sm:$0xff]  ;;  %v587_v31 = vpack.c.bf16 %v531_v61, %v529_v53 }
 0x2bc   :  { %v3202_v40 = vsub.f32 %v3201_v50, %v2187_v62  ;;  %v589_v58 = vpack.c.bf16 %v535_v15, %v533_v8  ;;  %v2345_v19 = vpack.c.bf16 %v539_v45, %v537_v41  ;;  %v2347_v50 = vpack.c.bf16 %v543_v29, %v541_v24 }
 0x2bd   :  { %v2349_v62 = vpack.c.bf16 %v547_v27, %v545_v36  ;;  %v2355_v53 = vpack.c.bf16 %v559_v0, %v557_v60  ;;  %v2357_v61 = vpack.c.bf16 %v563_v23, %v561_v13  ;;  %v2359_v8 = vpack.c.bf16 %v567_v47, %v565_v33  ;;  %v3204_v47 = vld [vmem:[#allocation8_spill] sm:$0xff] }
 0x2be   :  { %v585_v42 = vpack.c.bf16 %v3202_v40, %v3200_v9  ;;  %3203 = vst [vmem:[#allocation18_spill] sm:$0xff] %v2345_v19  ;;  %v2351_v9 = vpack.c.bf16 %v551_v48, %v549_v44  ;;  %v2353_v40 = vpack.c.bf16 %v555_v56, %v553_v52  ;;  %v2361_v15 = vpack.c.bf16 %v571_v63, %v569_v55  ;;  %v3205_v55 = vld [vmem:[#allocation43_spill] sm:$0xff] }
 0x2bf   :  { %v2363_v41 = vpack.c.bf16 %v575_v6, %v573_v21  ;;  %v582_v45 = vpack.c.bf16 %v520_v28, %v518_v37  ;;  %v584_v19 = vpack.c.bf16 %v524_v39, %v522_v34  ;;  %v586_v24 = vpack.c.bf16 %v528_v51, %v526_v30 }
 0x2c0   :  { %v588_v29 = vpack.c.bf16 %v532_v2, %v530_v43  ;;  %v590_v36 = vpack.c.bf16 %v536_v12, %v534_v4  ;;  %v592_v27 = vpack.c.bf16 %v540_v22, %v538_v18  ;;  %v594_v44 = vpack.c.bf16 %v544_v35, %v542_v26 }
 0x2c1   :  { %v596_v48 = vpack.c.bf16 %v548_v49, %v546_v54  ;;  %v2365_v52 = vpack.c.bf16 %v552_v32, %v550_v16  ;;  %v2367_v56 = vpack.c.bf16 %v556_v17, %v554_v57  ;;  %v2369_v60 = vpack.c.bf16 %v560_v38, %v558_v25  ;;  %v3207_v49 = vld [vmem:[#allocation45_spill] sm:$0xff]  ;;  %v3209_v57 = vld [vmem:[#allocation7_spill] sm:$0xff] }
 0x2c2   :  { %v2371_v0 = vpack.c.bf16 %v564_v59, %v562_v46  ;;  %v2373_v13 = vpack.c.bf16 %v568_v20, %v566_v11  ;;  %v2375_v23 = vpack.c.bf16 %v572_v10, %v570_v14  ;;  %v2377_v33 = vpack.c.bf16 %v576_v3, %v574_v7  ;;  %v3210_v16 = vld [vmem:[#allocation41_spill] sm:$0xff]  ;;  %v3212_v46 = vld [vmem:[#allocation42_spill] sm:$0xff] }
 0x2c3   :  { %v2381_v63 = vadd.f32 %v3205_v55, %v3204_v47  ;;  %v2385_v32 = vadd.f32 %v3207_v49, %v3204_v47  ;;  %v2389_v38 = vadd.f32 %v3210_v16, %v3209_v57  ;;  %v2393_v20 = vadd.f32 %v3212_v46, %v3209_v57 }
 0x2c4   :  { %v617_v10 = vmul.bf16 1069105081, %v582_v45  ;;  %v614_v14 = vmul.bf16 1069105081, %v581_v5  ;;  %v623_v54 = vmul.bf16 1069105081, %v584_v19 }
 0x2c5   :  { %3206 = vst [vmem:[#allocation19_spill] sm:$0xff] %v2381_v63  ;;  %3208 = vst [vmem:[#allocation20_spill] sm:$0xff] %v2385_v32  ;;  %v620_v11 = vmul.bf16 1069105081, %v583_v1  ;;  %v629_v17 = vmul.bf16 1069105081, %v586_v24 }
 0x2c6   :  { %3211 = vst [vmem:[#allocation21_spill] sm:$0xff] %v2389_v38  ;;  %3213 = vst [vmem:[#allocation22_spill] sm:$0xff] %v2393_v20  ;;  %1649 = vpow.bf16 %v617_v10  ;;  %v626_v59 = vmul.bf16 1069105081, %v585_v42  ;;  %v635_v21 = vmul.bf16 1069105081, %v588_v29 }
 0x2c7   :  { %1651 = vpow.bf16 %v614_v14  ;;  %v632_v6 = vmul.bf16 1069105081, %v587_v31  ;;  %v641_v37 = vmul.bf16 1069105081, %v590_v36  ;;  %v638_v30 = vmul.bf16 1069105081, %v589_v58 }
 0x2c8   :  { %1653 = vpow.bf16 %v623_v54  ;;  %v647_v51 = vmul.bf16 1069105081, %v592_v27  ;;  %v3214_v2 = vld [vmem:[#allocation18_spill] sm:$0xff]  ;;  %v653_v12 = vmul.bf16 1069105081, %v594_v44 }
 0x2c9   :  { %1655 = vpow.bf16 %v620_v11  ;;  %v644_v4 = vmul.bf16 1069105081, %v3214_v2  ;;  %v650_v26 = vmul.bf16 1069105081, %v2347_v50  ;;  %v659_v35 = vmul.bf16 1069105081, %v596_v48 }
 0x2ca   :  { %1657 = vpow.bf16 %v629_v17  ;;  %v656_v42 = vmul.bf16 1069105081, %v2349_v62  ;;  %v665_v31 = vmul.bf16 1069105081, %v2365_v52  ;;  %v662_v50 = vmul.bf16 1069105081, %v2351_v9 }
 0x2cb   :  { %1659 = vpow.bf16 %v626_v59  ;;  %v671_v45 = vmul.bf16 1069105081, %v2367_v56  ;;  %v668_v29 = vmul.bf16 1069105081, %v2353_v40  ;;  %v677_v36 = vmul.bf16 1069105081, %v2369_v60 }
 0x2cc   :  { %1661 = vpow.bf16 %v635_v21  ;;  %v674_v44 = vmul.bf16 1069105081, %v2355_v53  ;;  %v683_v48 = vmul.bf16 1069105081, %v2371_v0  ;;  %v680_v56 = vmul.bf16 1069105081, %v2357_v61 }
 0x2cd   :  { %1663 = vpow.bf16 %v632_v6  ;;  %v689_v60 = vmul.bf16 1069105081, %v2373_v13  ;;  %v686_v47 = vmul.bf16 1069105081, %v2359_v8  ;;  %v695_v55 = vmul.bf16 1069105081, %v2375_v23 }
 0x2ce   :  { %1665 = vpow.bf16 %v641_v37  ;;  %v692_v13 = vmul.bf16 1069105081, %v2361_v15  ;;  %v701_v57 = vmul.bf16 1069105081, %v2377_v33  ;;  %v698_v46 = vmul.bf16 1069105081, %v2363_v41 }
 0x2cf   :  { %1667 = vpow.bf16 %v638_v30  ;;  %v3215_v23 = vld [vmem:[#allocation46_spill] sm:$0xff]  ;;  %v3216_v11 = vld [vmem:[#allocation44_spill] sm:$0xff]  ;;  %v3217_v30 = vmov 1065369472   ;;  %v3219_v2 = vld [vmem:[#allocation11_spill] sm:$0xff] }
 0x2d0   :  { %1669 = vpow.bf16 %v647_v51  ;;  %v707_v10 = vmul.bf16 1069105081, %v3215_v23  ;;  %v704_v15 = vmul.bf16 1069105081, %v3216_v11  ;;  %v3218_v51 = vld [vmem:[#allocation12_spill] sm:$0xff] }
 0x2d1   :  { %v2399_v28 = vpop.eup %1649  ;;  %1671 = vpow.bf16 %v644_v4  ;;  %v3220_v4 = vpack.c.bf16 %v3218_v51, %v3219_v2  ;;  %v1787_v51 = vld [vmem:[%s3051_s0 + $0x10] sm:$0xff] }
 0x2d2   :  { %v2401_v34 = vpop.eup %1651  ;;  %709 = vmatprep.subr.bf16.mxu0 %v2399_v28  ;;  %1673 = vpow.bf16 %v653_v12 }
 0x2d3   :  { %v2404_v39 = vpop.eup %1653  ;;  %710 = vmatpush1.bf16.msra.mxu0 %v2401_v34  ;;  %1675 = vpow.bf16 %v650_v26  ;;  %v3224_v26 = vld [vmem:[#allocation10_spill] sm:$0xff] }
 0x2d4   :  { %711 = vmatprep.subr.bf16.mxu0 %v2404_v39  ;;  %v2408_v43 = vpop.eup %1655  ;;  %1677 = vpow.bf16 %v659_v35  ;;  %v3225_v35 = vld [vmem:[#allocation9_spill] sm:$0xff] }
 0x2d5   :  { %v2410_v25 = vpop.eup %1657  ;;  %1679 = vpow.bf16 %v656_v42 }
 0x2d6   :  { %v2415_v18 = vpop.eup %1659  ;;  %1681 = vpow.bf16 %v665_v31 }
 0x2d7   :  { %712 = vmatpush1.bf16.msra.mxu0 %v2408_v43  ;;  %v2417_v22 = vpop.eup %1661  ;;  %1683 = vpow.bf16 %v662_v50 }
 0x2d8   :  { %713 = vmatprep.subr.bf16.mxu0 %v2410_v25  ;;  %v2422_v5 = vpop.eup %1663  ;;  %1685 = vpow.bf16 %v671_v45 }
 0x2d9   :  { %v2424_v1 = vpop.eup %1665  ;;  %1687 = vpow.bf16 %v668_v29 }
 0x2da   :  { %v2430_v58 = vpop.eup %1667  ;;  %1689 = vpow.bf16 %v677_v36 }
 0x2db   :  { %714 = vmatpush1.bf16.msra.mxu0 %v2415_v18  ;;  %v2432_v19 = vpop.eup %1669  ;;  %1691 = vpow.bf16 %v674_v44 }
 0x2dc   :  { %715 = vmatprep.subr.bf16.mxu0 %v2417_v22  ;;  %v2438_v62 = vpop.eup %1671  ;;  %1693 = vpow.bf16 %v683_v48 }
 0x2dd   :  { %v2440_v24 = vpop.eup %1673  ;;  %1695 = vpow.bf16 %v680_v56 }
 0x2de   :  { %v2446_v9 = vpop.eup %1675  ;;  %1697 = vpow.bf16 %v689_v60 }
 0x2df   :  { %716 = vmatpush1.bf16.msra.mxu0 %v2422_v5  ;;  %v2448_v27 = vpop.eup %1677  ;;  %1699 = vpow.bf16 %v686_v47  ;;  %v798_v47 = vlaneseq }
 0x2e0   :  { %717 = vmatprep.subr.bf16.mxu0 %v2424_v1  ;;  %v2454_v40 = vpop.eup %1679  ;;  %1701 = vpow.bf16 %v695_v55 }
 0x2e1   :  { %v2456_v52 = vpop.eup %1681  ;;  %1703 = vpow.bf16 %v692_v13  ;;  %v799_v55 = vshrl.u32 %v798_v47, 7 }
 0x2e2   :  { %v2462_v53 = vpop.eup %1683  ;;  %1705 = vpow.bf16 %v701_v57 }
 0x2e3   :  { %718 = vmatpush1.bf16.msra.mxu0 %v2430_v58  ;;  %v2464_v0 = vpop.eup %1685  ;;  %1707 = vpow.bf16 %v698_v46 }
 0x2e4   :  { %719 = vmatprep.subr.bf16.mxu0 %v2432_v19  ;;  %v1688_v61 = vpop.eup %1687  ;;  %1709 = vpow.bf16 %v707_v10 }
 0x2e5   :  { %v1690_v49 = vpop.eup %1689  ;;  %1711 = vpow.bf16 %v704_v15 }
 0x2e6   :  { %v1692_v16 = vpop.eup %1691 }
 0x2e7   :  { %720 = vmatpush1.bf16.msra.mxu0 %v2438_v62  ;;  %v1694_v8 = vpop.eup %1693 }
 0x2e8   :  { %721 = vmatprep.subr.bf16.mxu0 %v2440_v24  ;;  %v1696_v14 = vpop.eup %1695 }
 0x2e9   :  { %v1698_v54 = vpop.eup %1697 }
 0x2ea   :  { %v1700_v33 = vpop.eup %1699 }
 0x2eb   :  { %722 = vmatpush1.bf16.msra.mxu0 %v2446_v9  ;;  %v1702_v17 = vpop.eup %1701 }
 0x2ec   :  { %723 = vmatprep.subr.bf16.mxu0 %v2448_v27  ;;  %v1704_v41 = vpop.eup %1703 }
 0x2ed   :  { %v1706_v59 = vpop.eup %1705 }
 0x2ee   :  { %v1708_v21 = vpop.eup %1707 }
 0x2ef   :  { %724 = vmatpush1.bf16.msra.mxu0 %v2454_v40  ;;  %v1710_v6 = vpop.eup %1709 }
 0x2f0   :  { %725 = vmatprep.subr.bf16.mxu0 %v2456_v52  ;;  %v1712_v37 = vpop.eup %1711 }
 0x2f3   :  { %726 = vmatpush1.bf16.msra.mxu0 %v2462_v53 }
 0x2f4   :  { %727 = vmatprep.subr.bf16.mxu0 %v2464_v0 }
 0x2f7   :  { %728 = vmatpush1.bf16.msra.mxu0 %v1688_v61 }
 0x2f8   :  { %729 = vmatprep.subr.bf16.mxu0 %v1690_v49 }
 0x2fb   :  { %730 = vmatpush1.bf16.msra.mxu0 %v1692_v16 }
 0x2fc   :  { %731 = vmatprep.subr.bf16.mxu0 %v1694_v8 }
 0x2ff   :  { %732 = vmatpush1.bf16.msra.mxu0 %v1696_v14 }
 0x300   :  { %733 = vmatprep.subr.bf16.mxu0 %v1698_v54 }
 0x303   :  { %734 = vmatpush1.bf16.msra.mxu0 %v1700_v33 }
 0x304   :  { %735 = vmatprep.subr.bf16.mxu0 %v1702_v17 }
 0x307   :  { %736 = vmatpush1.bf16.msra.mxu0 %v1704_v41 }
 0x308   :  { %737 = vmatprep.subr.bf16.mxu0 %v1706_v59 }
 0x30b   :  { %738 = vmatpush1.bf16.msra.mxu0 %v1708_v21 }
 0x30c   :  { %739 = vmatprep.subr.bf16.mxu0 %v1710_v6 }
 0x30d   :  { %v926_v42 = vpop.trf.xlu0 }
 0x30e   :  { %v942_v29 = vpop.trf.xlu1 }
 0x30f   :  { %740 = vmatpush1.bf16.msra.mxu0 %v1712_v37 }
 0x310   :  { %750 = vmatprep.subr.bf16.mxu0 %v2399_v28  ;;  %v3221_v28 = vld [vmem:[#allocation6_spill] sm:$0xff] }
 0x311   :  { %v927_v31 = vpop.trf.xlu0 }
 0x312   :  { %742 = vmatmul.mubr.bf16.vlgmr.msra.gmra.mrb[8].mxu0 %v3217_v30  ;;  %v943_v36 = vpop.trf.xlu1 }
 0x313   :  { %751 = vmatpush1.bf16.msra.mxu0 %v2401_v34  ;;  %782 = vmatprep.mubr.bf16.mxu0 %v3220_v4  ;;  %v3222_v34 = vld [vmem:[#allocation39_spill] sm:$0xff]  ;;  %v1788_v4 = vld [vmem:[%s3051_s0 + $0x18] sm:$0xff] }
 0x314   :  { %752 = vmatprep.subr.bf16.mxu0 %v2404_v39  ;;  %v890_v39 = vadd.f32 %v3222_v34, %v3221_v28 }
 0x316   :  { %v912_v12 = vpack.c.bf16 %v890_v39, %v890_v39 }
 0x317   :  { %753 = vmatpush1.bf16.msra.mxu0 %v2408_v43  ;;  %v3223_v43 = vld [vmem:[#allocation40_spill] sm:$0xff] }
 0x318   :  { %754 = vmatprep.subr.bf16.mxu0 %v2410_v25  ;;  %v892_v25 = vadd.f32 %v3223_v43, %v3221_v28 }
 0x31b   :  { %755 = vmatpush1.bf16.msra.mxu0 %v2415_v18  ;;  %v913_v18 = vpack.c.bf16 %v892_v25, %v892_v25 }
 0x31c   :  { %756 = vmatprep.subr.bf16.mxu0 %v2417_v22  ;;  %v999_v22 = vsel %vm243_vm1, %v912_v12, 0 }
 0x31f   :  { %757 = vmatpush1.bf16.msra.mxu0 %v2422_v5  ;;  %v3226_v5 = vpack.c.bf16 %v3224_v26, %v3225_v35 }
 0x320   :  { %758 = vmatprep.subr.bf16.mxu0 %v2424_v1  ;;  %v3227_v1 = vmov 0  }
 0x323   :  { %759 = vmatpush1.bf16.msra.mxu0 %v2430_v58  ;;  %v928_v58 = vpop.trf.xlu0 }
 0x324   :  { %760 = vmatprep.subr.bf16.mxu0 %v2432_v19 }
 0x327   :  { %761 = vmatpush1.bf16.msra.mxu0 %v2438_v62  ;;  %v929_v19 = vpop.trf.xlu0 }
 0x328   :  { %762 = vmatprep.subr.bf16.mxu0 %v2440_v24 }
 0x32b   :  { %763 = vmatpush1.bf16.msra.mxu0 %v2446_v9  ;;  %v930_v50 = vpop.trf.xlu0  ;;  %v944_v9 = vpop.trf.xlu1 }
 0x32c   :  { %764 = vmatprep.subr.bf16.mxu0 %v2448_v27 }
 0x32f   :  { %765 = vmatpush1.bf16.msra.mxu0 %v2454_v40  ;;  %v931_v45 = vpop.trf.xlu0  ;;  %v945_v27 = vpop.trf.xlu1 }
 0x330   :  { %766 = vmatprep.subr.bf16.mxu0 %v2456_v52 }
 0x333   :  { %767 = vmatpush1.bf16.msra.mxu0 %v2462_v53  ;;  %v932_v62 = vpop.trf.xlu0  ;;  %v946_v44 = vpop.trf.xlu1 }
 0x334   :  { %768 = vmatprep.subr.bf16.mxu0 %v2464_v0 }
 0x337   :  { %769 = vmatpush1.bf16.msra.mxu0 %v1688_v61  ;;  %v933_v24 = vpop.trf.xlu0  ;;  %v947_v48 = vpop.trf.xlu1 }
 0x338   :  { %770 = vmatprep.subr.bf16.mxu0 %v1690_v49  ;;  %v2542_v49 = vstv %s3054_s3 }
 0x339   :  { %3228 = vst [vmem:[#allocation23_spill] sm:$0xff] %v2542_v49 }
 0x33b   :  { %771 = vmatpush1.bf16.msra.mxu0 %v1692_v16  ;;  %v948_v40 = vpop.trf.xlu1  ;;  %v2545_v16 = vsub.s32 0, %v799_v55 }
 0x33c   :  { %772 = vmatprep.subr.bf16.mxu0 %v1694_v8 }
 0x33d   :  { %3229 = vst [vmem:[#allocation24_spill] sm:$0xff] %v2545_v16 }
 0x33f   :  { %773 = vmatpush1.bf16.msra.mxu0 %v1696_v14  ;;  %v949_v52 = vpop.trf.xlu1 }
 0x340   :  { %774 = vmatprep.subr.bf16.mxu0 %v1698_v54 }
 0x343   :  { %775 = vmatpush1.bf16.msra.mxu0 %v1700_v33  ;;  %v1785_v33 = vld [vmem:[%s3051_s0] sm:$0xff] }
 0x344   :  { %776 = vmatprep.subr.bf16.mxu0 %v1702_v17 }
 0x347   :  { %777 = vmatpush1.bf16.msra.mxu0 %v1704_v41 }
 0x348   :  { %778 = vmatprep.subr.bf16.mxu0 %v1706_v59 }
 0x34b   :  { %779 = vmatpush1.bf16.msra.mxu0 %v1708_v21  ;;  %v1786_v21 = vld [vmem:[%s3051_s0 + $0x8] sm:$0xff] }
 0x34c   :  { %780 = vmatprep.subr.bf16.mxu0 %v1710_v6 }
 0x34f   :  { %781 = vmatpush1.bf16.msra.mxu0 %v1712_v37 }
 0x350   :  { %1617 = vmatprep.subr.msk.bf16.mxu0 %vm243_vm1, %v913_v18 }
 0x352   :  { %783 = vmatmul.mubr.bf16.vlgmr.msra.gmra.mrb[12].mxu0 %v3226_v5 }
 0x353   :  { %1005 = vmatpush1.bf16.msra.mxu0 %v999_v22  ;;  %1036 = vmatprep.mubr.bf16.mxu0 %v3227_v1 }
 0x35a   :  { %1618 = vmatmul.mubr.msk.bf16.vlgmr.msra.gmra.mrb[16].mxu0 %vm194_vm2, %v926_v42 }
 0x35b   :  { %1046 = vmatprep.mubr.bf16.mxu0 %v3227_v1 }
 0x362   :  { %1619 = vmatmul.mubr.msk.bf16.gmra.mrb[20].mxu0 %vm194_vm2, %v927_v31 }
 0x363   :  { %1056 = vmatprep.mubr.bf16.mxu0 %v3227_v1 }
 0x36a   :  { %1620 = vmatmul.mubr.msk.bf16.gmra.mrb[24].mxu0 %vm194_vm2, %v928_v58 }
 0x36b   :  { %1066 = vmatprep.mubr.bf16.mxu0 %v3227_v1 }
 0x372   :  { %1621 = vmatmul.mubr.msk.bf16.gmra.mrb[28].mxu0 %vm194_vm2, %v929_v19 }
 0x373   :  { %1076 = vmatprep.mubr.bf16.mxu0 %v3227_v1 }
 0x37a   :  { %1622 = vmatmul.mubr.msk.bf16.gmra.mrb[32].mxu0 %vm194_vm2, %v930_v50 }
 0x37b   :  { %1086 = vmatprep.mubr.bf16.mxu0 %v3227_v1 }
 0x382   :  { %1623 = vmatmul.mubr.msk.bf16.gmra.mrb[36].mxu0 %vm194_vm2, %v931_v45 }
 0x383   :  { %1096 = vmatprep.mubr.bf16.mxu0 %v3227_v1 }
 0x38a   :  { %1624 = vmatmul.mubr.msk.bf16.gmra.mrb[40].mxu0 %vm194_vm2, %v932_v62 }
 0x38b   :  { %1106 = vmatprep.mubr.bf16.mxu0 %v3227_v1 }
 0x392   :  { %1625 = vmatmul.mubr.msk.bf16.gmra.mrb[44].mxu0 %vm194_vm2, %v933_v24 }
 0x393   :  { %1116 = vmatprep.mubr.bf16.mxu0 %v3227_v1 }
 0x39a   :  { %1626 = vmatmul.mubr.msk.bf16.gmra.mrb[48].mxu0 %vm194_vm2, %v942_v29 }
 0x39b   :  { %1126 = vmatprep.mubr.bf16.mxu0 %v3227_v1 }
 0x3a2   :  { %1627 = vmatmul.mubr.msk.bf16.gmra.mrb[52].mxu0 %vm194_vm2, %v943_v36 }
 0x3a3   :  { %1136 = vmatprep.mubr.bf16.mxu0 %v3227_v1 }
 0x3aa   :  { %1628 = vmatmul.mubr.msk.bf16.gmra.mrb[56].mxu0 %vm194_vm2, %v944_v9 }
 0x3ab   :  { %1146 = vmatprep.mubr.bf16.mxu0 %v3227_v1 }
 0x3b2   :  { %1629 = vmatmul.mubr.msk.bf16.gmra.mrb[60].mxu0 %vm194_vm2, %v945_v27 }
 0x3b3   :  { %1156 = vmatprep.mubr.bf16.mxu0 %v3227_v1 }
 0x3ba   :  { %1630 = vmatmul.mubr.msk.bf16.gmra.mrb[64].mxu0 %vm194_vm2, %v946_v44 }
 0x3bb   :  { %1166 = vmatprep.mubr.bf16.mxu0 %v3227_v1 }
 0x3c2   :  { %1631 = vmatmul.mubr.msk.bf16.gmra.mrb[68].mxu0 %vm194_vm2, %v947_v48 }
 0x3c3   :  { %1176 = vmatprep.mubr.bf16.mxu0 %v3227_v1 }
 0x3ca   :  { %1632 = vmatmul.mubr.msk.bf16.gmra.mrb[72].mxu0 %vm194_vm2, %v948_v40 }
 0x3cb   :  { %1186 = vmatprep.mubr.bf16.mxu0 %v3227_v1 }
 0x3d2   :  { %1633 = vmatmul.mubr.msk.bf16.gmra.mrb[76].mxu0 %vm194_vm2, %v949_v52 }
 0x3e5   :  { %v743_v56 = vpop.f32.mrb[8].mxu0 }
 0x3e6   :  { %v745_v60 = vpop.f32.mrb[9].mxu0  ;;  %1713 = vrcp.f32 %v743_v56 }
 0x3e7   :  { %v747_v53 = vpop.f32.mrb[10].mxu0  ;;  %1715 = vrcp.f32 %v745_v60 }
 0x3e8   :  { %v748_v0 = vpop.f32.mrb[11].mxu0 }
 0x3f0   :  { %v1714_v61 = vpop.eup %1713 }
 0x3f1   :  { %v1716_v13 = vpop.eup %1715  ;;  %v796_v57 = vmul.f32 %v1714_v61, %v2542_v49 }
 0x3f2   :  { %v797_v8 = vmul.f32 %v1716_v13, %v2542_v49 }
 0x3f3   :  { %v801_v46 = vrot.slane %v796_v57, %v2545_v16 }
 0x3f4   :  { %v805_v10 = vrot.slane %v797_v8, %v2545_v16 }
 0x425   :  { %v784_v23 = vpop.f32.mrb[12].mxu0 }
 0x426   :  { %v806_v14 = vmul.f32 %v801_v46, %v784_v23  ;;  %v786_v54 = vpop.f32.mrb[13].mxu0 }
 0x427   :  { %v807_v11 = vmul.f32 %v805_v10, %v786_v54  ;;  %v788_v15 = vpop.f32.mrb[14].mxu0 }
 0x428   :  { %v810_v17 = vadd.f32 %v1785_v33, %v806_v14  ;;  %v808_v41 = vmul.f32 %v801_v46, %v788_v15  ;;  %v790_v59 = vpop.f32.mrb[15].mxu0 }
 0x429   :  { %v811_v6 = vadd.f32 %v1786_v21, %v807_v11  ;;  %v809_v37 = vmul.f32 %v805_v10, %v790_v59 }
 0x42a   :  { %814 = vst [vmem:[#allocation3] sm:$0xff] %v810_v17  ;;  %v812_v2 = vadd.f32 %v1787_v51, %v808_v41 }
 0x42b   :  { %815 = vst [vmem:[#allocation3 + $0x8] sm:$0xff] %v811_v6  ;;  %v813_v28 = vadd.f32 %v1788_v4, %v809_v37 }
 0x42c   :  { %816 = vst [vmem:[#allocation3 + $0x10] sm:$0xff] %v812_v2 }
 0x42d   :  { %817 = vst [vmem:[#allocation3 + $0x18] sm:$0xff] %v813_v28  ;;  %v2562_v34 = vpop.f32.mrb[16].mxu0 }
 0x42e   :  { %v2564_v39 = vpop.f32.mrb[17].mxu0 }
 0x42f   :  { %v2566_v43 = vpop.f32.mrb[18].mxu0 }
 0x430   :  { %3230 = vst [vmem:[#allocation25_spill] sm:$0xff] %v2566_v43  ;;  %v2568_v25 = vpop.f32.mrb[19].mxu0 }
 0x435   :  { %v2570_v12 = vpop.f32.mrb[20].mxu0 }
 0x436   :  { %3231 = vst [vmem:[#allocation26_spill] sm:$0xff] %v2570_v12  ;;  %v1197_v18 = vmax.f32 %v2562_v34, %v2570_v12  ;;  %v2574_v22 = vpop.f32.mrb[21].mxu0 }
 0x437   :  { %v1234_v26 = vmax.f32 %v2564_v39, %v2574_v22  ;;  %v2578_v35 = vpop.f32.mrb[22].mxu0 }
 0x438   :  { %3232 = vst [vmem:[#allocation27_spill] sm:$0xff] %v2578_v35  ;;  %v1198_v5 = vmax.f32 %v2566_v43, %v2578_v35  ;;  %v2582_v1 = vpop.f32.mrb[23].mxu0 }
 0x439   :  { %v1235_v42 = vmax.f32 %v2568_v25, %v2582_v1 }
 0x43d   :  { %v2586_v31 = vpop.f32.mrb[24].mxu0 }
 0x43e   :  { %3233 = vst [vmem:[#allocation28_spill] sm:$0xff] %v2586_v31  ;;  %v1199_v58 = vmax.f32 %v1197_v18, %v2586_v31  ;;  %v2589_v19 = vpop.f32.mrb[25].mxu0 }
 0x43f   :  { %v1236_v50 = vmax.f32 %v1234_v26, %v2589_v19  ;;  %v2592_v45 = vpop.f32.mrb[26].mxu0 }
 0x440   :  { %v1200_v62 = vmax.f32 %v1198_v5, %v2592_v45  ;;  %v2595_v24 = vpop.f32.mrb[27].mxu0 }
 0x441   :  { %v1237_v29 = vmax.f32 %v1235_v42, %v2595_v24 }
 0x445   :  { %v2598_v36 = vpop.f32.mrb[28].mxu0 }
 0x446   :  { %v1201_v9 = vmax.f32 %v1199_v58, %v2598_v36  ;;  %v2601_v27 = vpop.f32.mrb[29].mxu0 }
 0x447   :  { %v1238_v44 = vmax.f32 %v1236_v50, %v2601_v27  ;;  %v2604_v48 = vpop.f32.mrb[30].mxu0 }
 0x448   :  { %v1202_v40 = vmax.f32 %v1200_v62, %v2604_v48  ;;  %v2607_v52 = vpop.f32.mrb[31].mxu0 }
 0x449   :  { %v1239_v56 = vmax.f32 %v1237_v29, %v2607_v52 }
 0x44d   :  { %v2610_v60 = vpop.f32.mrb[32].mxu0 }
 0x44e   :  { %v1203_v53 = vmax.f32 %v1201_v9, %v2610_v60  ;;  %v2613_v0 = vpop.f32.mrb[33].mxu0 }
 0x44f   :  { %v1240_v47 = vmax.f32 %v1238_v44, %v2613_v0  ;;  %v2616_v55 = vpop.f32.mrb[34].mxu0 }
 0x450   :  { %v1204_v61 = vmax.f32 %v1202_v40, %v2616_v55  ;;  %v2619_v13 = vpop.f32.mrb[35].mxu0 }
 0x451   :  { %v1241_v57 = vmax.f32 %v1239_v56, %v2619_v13 }
 0x455   :  { %v2622_v8 = vpop.f32.mrb[36].mxu0 }
 0x456   :  { %v1205_v46 = vmax.f32 %v1203_v53, %v2622_v8  ;;  %v2625_v23 = vpop.f32.mrb[37].mxu0 }
 0x457   :  { %3234 = vst [vmem:[#allocation29_spill] sm:$0xff] %v2625_v23  ;;  %v1242_v10 = vmax.f32 %v1240_v47, %v2625_v23  ;;  %v2628_v14 = vpop.f32.mrb[38].mxu0 }
 0x458   :  { %v1206_v54 = vmax.f32 %v1204_v61, %v2628_v14  ;;  %v2631_v11 = vpop.f32.mrb[39].mxu0 }
 0x459   :  { %3235 = vst [vmem:[#allocation30_spill] sm:$0xff] %v2631_v11  ;;  %v1243_v15 = vmax.f32 %v1241_v57, %v2631_v11 }
 0x45d   :  { %v2634_v33 = vpop.f32.mrb[40].mxu0 }
 0x45e   :  { %v1207_v17 = vmax.f32 %v1205_v46, %v2634_v33  ;;  %v2637_v41 = vpop.f32.mrb[41].mxu0 }
 0x45f   :  { %3236 = vst [vmem:[#allocation31_spill] sm:$0xff] %v2637_v41  ;;  %v1244_v59 = vmax.f32 %v1242_v10, %v2637_v41  ;;  %v2640_v21 = vpop.f32.mrb[42].mxu0 }
 0x460   :  { %v1208_v6 = vmax.f32 %v1206_v54, %v2640_v21  ;;  %v2643_v37 = vpop.f32.mrb[43].mxu0 }
 0x461   :  { %3237 = vst [vmem:[#allocation32_spill] sm:$0xff] %v2643_v37  ;;  %v1245_v51 = vmax.f32 %v1243_v15, %v2643_v37 }
 0x465   :  { %v2646_v2 = vpop.f32.mrb[44].mxu0 }
 0x466   :  { %v1209_v4 = vmax.f32 %v1207_v17, %v2646_v2  ;;  %v2649_v28 = vpop.f32.mrb[45].mxu0 }
 0x467   :  { %3238 = vst [vmem:[#allocation33_spill] sm:$0xff] %v2649_v28  ;;  %v1246_v18 = vmax.f32 %v1244_v59, %v2649_v28  ;;  %v2652_v26 = vpop.f32.mrb[46].mxu0 }
 0x468   :  { %v1210_v5 = vmax.f32 %v1208_v6, %v2652_v26  ;;  %v2655_v42 = vpop.f32.mrb[47].mxu0 }
 0x469   :  { %3239 = vst [vmem:[#allocation34_spill] sm:$0xff] %v2655_v42  ;;  %v1247_v58 = vmax.f32 %v1245_v51, %v2655_v42 }
 0x46d   :  { %v2658_v50 = vpop.f32.mrb[48].mxu0 }
 0x46e   :  { %v1211_v62 = vmax.f32 %v1209_v4, %v2658_v50  ;;  %v2661_v29 = vpop.f32.mrb[49].mxu0 }
 0x46f   :  { %3240 = vst [vmem:[#allocation35_spill] sm:$0xff] %v2661_v29  ;;  %v1248_v9 = vmax.f32 %v1246_v18, %v2661_v29  ;;  %v2664_v44 = vpop.f32.mrb[50].mxu0 }
 0x470   :  { %v1212_v40 = vmax.f32 %v1210_v5, %v2664_v44  ;;  %v2667_v56 = vpop.f32.mrb[51].mxu0 }
 0x471   :  { %3241 = vst [vmem:[#allocation36_spill] sm:$0xff] %v2667_v56  ;;  %v1249_v53 = vmax.f32 %v1247_v58, %v2667_v56 }
 0x475   :  { %v2670_v47 = vpop.f32.mrb[52].mxu0 }
 0x476   :  { %v1213_v61 = vmax.f32 %v1211_v62, %v2670_v47  ;;  %v2673_v57 = vpop.f32.mrb[53].mxu0 }
 0x477   :  { %3242 = vst [vmem:[#allocation37_spill] sm:$0xff] %v2673_v57  ;;  %v1250_v46 = vmax.f32 %v1248_v9, %v2673_v57  ;;  %v2676_v10 = vpop.f32.mrb[54].mxu0 }
 0x478   :  { %v1214_v54 = vmax.f32 %v1212_v40, %v2676_v10  ;;  %v2679_v15 = vpop.f32.mrb[55].mxu0 }
 0x479   :  { %3243 = vst [vmem:[#allocation38_spill] sm:$0xff] %v2679_v15  ;;  %v1251_v17 = vmax.f32 %v1249_v53, %v2679_v15 }
 0x47d   :  { %v2682_v59 = vpop.f32.mrb[56].mxu0 }
 0x47e   :  { %v1215_v6 = vmax.f32 %v1213_v61, %v2682_v59  ;;  %v2685_v51 = vpop.f32.mrb[57].mxu0 }
 0x47f   :  { %3244 = vst [vmem:[#allocation13_spill] sm:$0xff] %v2685_v51  ;;  %v1252_v4 = vmax.f32 %v1250_v46, %v2685_v51  ;;  %v2688_v18 = vpop.f32.mrb[58].mxu0 }
 0x480   :  { %v1216_v5 = vmax.f32 %v1214_v54, %v2688_v18  ;;  %v2691_v58 = vpop.f32.mrb[59].mxu0 }
 0x481   :  { %3245 = vst [vmem:[#allocation14_spill] sm:$0xff] %v2691_v58  ;;  %v1253_v62 = vmax.f32 %v1251_v17, %v2691_v58 }
 0x485   :  { %v2694_v9 = vpop.f32.mrb[60].mxu0 }
 0x486   :  { %v1217_v40 = vmax.f32 %v1215_v6, %v2694_v9  ;;  %v2697_v53 = vpop.f32.mrb[61].mxu0 }
 0x487   :  { %3246 = vst [vmem:[#allocation15_spill] sm:$0xff] %v2697_v53  ;;  %v1254_v61 = vmax.f32 %v1252_v4, %v2697_v53  ;;  %v2700_v3 = vpop.f32.mrb[62].mxu0 }
 0x488   :  { %v1218_v46 = vmax.f32 %v1216_v5, %v2700_v3  ;;  %v2703_v7 = vpop.f32.mrb[63].mxu0 }
 0x489   :  { %3247 = vst [vmem:[#allocation16_spill] sm:$0xff] %v2703_v7  ;;  %v1255_v54 = vmax.f32 %v1253_v62, %v2703_v7 }
 0x48d   :  { %v2706_v16 = vpop.f32.mrb[64].mxu0 }
 0x48e   :  { %v1219_v17 = vmax.f32 %v1217_v40, %v2706_v16  ;;  %v2709_v49 = vpop.f32.mrb[65].mxu0 }
 0x48f   :  { %3248 = vst [vmem:[#allocation17_spill] sm:$0xff] %v2709_v49  ;;  %v1256_v6 = vmax.f32 %v1254_v61, %v2709_v49  ;;  %v2712_v38 = vpop.f32.mrb[66].mxu0 }
 0x490   :  { %v1220_v4 = vmax.f32 %v1218_v46, %v2712_v38  ;;  %v2715_v63 = vpop.f32.mrb[67].mxu0 }
 0x491   :  { %3249 = vst [vmem:[#allocation8_spill] sm:$0xff] %v2715_v63  ;;  %v1257_v5 = vmax.f32 %v1255_v54, %v2715_v63 }
 0x495   :  { %v2718_v20 = vpop.f32.mrb[68].mxu0 }
 0x496   :  { %v1221_v62 = vmax.f32 %v1219_v17, %v2718_v20  ;;  %v2721_v32 = vpop.f32.mrb[69].mxu0 }
 0x497   :  { %3250 = vst [vmem:[#allocation43_spill] sm:$0xff] %v2721_v32  ;;  %v1258_v40 = vmax.f32 %v1256_v6, %v2721_v32  ;;  %v2724_v30 = vpop.f32.mrb[70].mxu0 }
 0x498   :  { %v1222_v61 = vmax.f32 %v1220_v4, %v2724_v30  ;;  %v2727_v49 = vpop.f32.mrb[71].mxu0 }
 0x499   :  { %3251 = vst [vmem:[#allocation45_spill] sm:$0xff] %v2727_v49  ;;  %v1259_v46 = vmax.f32 %v1257_v5, %v2727_v49 }
 0x49d   :  { %v2730_v7 = vpop.f32.mrb[72].mxu0 }
 0x49e   :  { %v1223_v54 = vmax.f32 %v1221_v62, %v2730_v7  ;;  %v2733_v63 = vpop.f32.mrb[73].mxu0 }
 0x49f   :  { %3252 = vst [vmem:[#allocation7_spill] sm:$0xff] %v2733_v63  ;;  %v1260_v17 = vmax.f32 %v1258_v40, %v2733_v63  ;;  %v2736_v53 = vpop.f32.mrb[74].mxu0 }
 0x4a0   :  { %v1224_v6 = vmax.f32 %v1222_v61, %v2736_v53  ;;  %v2739_v32 = vpop.f32.mrb[75].mxu0 }
 0x4a1   :  { %3253 = vst [vmem:[#allocation41_spill] sm:$0xff] %v2739_v32  ;;  %v1261_v4 = vmax.f32 %v1259_v46, %v2739_v32 }
 0x4a5   :  { %v1188_v58 = vpop.f32.mrb[76].mxu0 }
 0x4a6   :  { %v1225_v51 = vmax.f32 %v1223_v54, %v1188_v58  ;;  %v2742_v15 = vpop.f32.mrb[77].mxu0 }
 0x4a7   :  { %v1262_v5 = vmax.f32 %v1260_v17, %v2742_v15  ;;  %v1192_v49 = vpop.f32.mrb[78].mxu0 }
 0x4a8   :  { %v1226_v62 = vmax.f32 %v1224_v6, %v1192_v49  ;;  %v1194_v57 = vpop.f32.mrb[79].mxu0 }
 0x4a9   :  { %v1263_v56 = vmax.f32 %v1261_v4, %v1194_v57 }
 0x4aa   :  { %v1227_v29 = vmax.f32 %v1225_v51, %v1226_v62  ;;  %v3258_v62 = vld [vmem:[#allocation30_spill] sm:$0xff] }
 0x4ab   :  { %v1264_v40 = vmax.f32 %v1262_v5, %v1263_v56 }
 0x4ac   :  { %v1228_v63 = vrot.slane %v1227_v29, 4 }
 0x4ad   :  { %v1265_v42 = vrot.slane %v1264_v40, 4 }
 0x4ae   :  { %v1229_v28 = vmax.f32 %v1227_v29, %v1228_v63 }
 0x4af   :  { %v1266_v61 = vmax.f32 %v1264_v40, %v1265_v42  ;;  %v3259_v40 = vld [vmem:[#allocation31_spill] sm:$0xff] }
 0x4b0   :  { %v1230_v37 = vrot.slane %v1229_v28, 2 }
 0x4b1   :  { %v1267_v41 = vrot.slane %v1266_v61, 2 }
 0x4b2   :  { %v1231_v11 = vmax.f32 %v1229_v28, %v1230_v37 }
 0x4b3   :  { %v1268_v46 = vmax.f32 %v1266_v61, %v1267_v41  ;;  %v3260_v61 = vld [vmem:[#allocation32_spill] sm:$0xff] }
 0x4b4   :  { %v1232_v32 = vrot.slane %v1231_v11, 1 }
 0x4b5   :  { %v1269_v23 = vrot.slane %v1268_v46, 1 }
 0x4b6   :  { %v2745_v54 = vmax.f32 %v1231_v11, %v1232_v32 }
 0x4b7   :  { %v2783_v5 = vmax.f32 %v1268_v46, %v1269_v23 }
 0x4b8   :  { %3254 = vst [vmem:[#allocation42_spill] sm:$0xff] %v2745_v54  ;;  %v1331_v17 = vsub.f32 %v1188_v58, %v2745_v54  ;;  %v1333_v6 = vsub.f32 %v1192_v49, %v2745_v54  ;;  %v1281_v11 = vsub.f32 %v2592_v45, %v2745_v54  ;;  %v1283_v49 = vsub.f32 %v2598_v36, %v2745_v54 }
 0x4b9   :  { %v1285_v28 = vsub.f32 %v2604_v48, %v2745_v54  ;;  %v1287_v42 = vsub.f32 %v2610_v60, %v2745_v54  ;;  %v1289_v29 = vsub.f32 %v2616_v55, %v2745_v54  ;;  %v1291_v58 = vsub.f32 %v2622_v8, %v2745_v54 }
 0x4ba   :  { %v2761_v37 = vpack.c.bf16 %v1333_v6, %v1331_v17  ;;  %v1293_v45 = vsub.f32 %v2628_v14, %v2745_v54  ;;  %v1295_v4 = vsub.f32 %v2634_v33, %v2745_v54  ;;  %v1297_v36 = vsub.f32 %v2640_v21, %v2745_v54 }
 0x4bb   :  { %v1299_v48 = vsub.f32 %v2646_v2, %v2745_v54  ;;  %v1301_v60 = vsub.f32 %v2652_v26, %v2745_v54  ;;  %v1303_v55 = vsub.f32 %v2658_v50, %v2745_v54  ;;  %v1305_v8 = vsub.f32 %v2664_v44, %v2745_v54 }
 0x4bc   :  { %3255 = vst [vmem:[#allocation18_spill] sm:$0xff] %v2761_v37  ;;  %v1307_v14 = vsub.f32 %v2670_v47, %v2745_v54  ;;  %v1309_v33 = vsub.f32 %v2676_v10, %v2745_v54  ;;  %v1311_v21 = vsub.f32 %v2682_v59, %v2745_v54  ;;  %v1313_v2 = vsub.f32 %v2688_v18, %v2745_v54 }
 0x4bd   :  { %v1315_v23 = vsub.f32 %v2694_v9, %v2745_v54  ;;  %v1317_v26 = vsub.f32 %v2700_v3, %v2745_v54  ;;  %v1319_v50 = vsub.f32 %v2706_v16, %v2745_v54  ;;  %v1321_v44 = vsub.f32 %v2712_v38, %v2745_v54 }
 0x4be   :  { %v1323_v47 = vsub.f32 %v2718_v20, %v2745_v54  ;;  %v1325_v10 = vsub.f32 %v2724_v30, %v2745_v54  ;;  %v1327_v59 = vsub.f32 %v2730_v7, %v2745_v54  ;;  %v1329_v18 = vsub.f32 %v2736_v53, %v2745_v54 }
 0x4bf   :  { %v1332_v3 = vsub.f32 %v2742_v15, %v2783_v5  ;;  %v1334_v16 = vsub.f32 %v1194_v57, %v2783_v5  ;;  %v1272_v38 = vsub.f32 %v2564_v39, %v2783_v5  ;;  %v1274_v20 = vsub.f32 %v2568_v25, %v2783_v5 }
 0x4c0   :  { %v1276_v30 = vsub.f32 %v2574_v22, %v2783_v5  ;;  %v1278_v7 = vsub.f32 %v2582_v1, %v2783_v5  ;;  %v1280_v9 = vsub.f32 %v2589_v19, %v2783_v5  ;;  %v1282_v15 = vsub.f32 %v2595_v24, %v2783_v5  ;;  %v3257_v1 = vld [vmem:[#allocation29_spill] sm:$0xff] }
 0x4c1   :  { %v1284_v57 = vsub.f32 %v2601_v27, %v2783_v5  ;;  %v2830_v53 = vpack.c.bf16 %v1334_v16, %v1332_v3  ;;  %v1286_v39 = vsub.f32 %v2607_v52, %v2783_v5  ;;  %v1288_v25 = vsub.f32 %v2613_v0, %v2783_v5  ;;  %v3261_v52 = vld [vmem:[#allocation33_spill] sm:$0xff]  ;;  %v3262_v0 = vld [vmem:[#allocation34_spill] sm:$0xff]  ;;  %v3264_v16 = vld [vmem:[#allocation36_spill] sm:$0xff] }
 0x4c2   :  { %v1290_v22 = vsub.f32 %v2619_v13, %v2783_v5  ;;  %v1292_v19 = vsub.f32 %v3257_v1, %v2783_v5  ;;  %v1294_v24 = vsub.f32 %v3258_v62, %v2783_v5  ;;  %v1296_v27 = vsub.f32 %v3259_v40, %v2783_v5  ;;  %v3263_v13 = vld [vmem:[#allocation35_spill] sm:$0xff]  ;;  %v3265_v62 = vld [vmem:[#allocation37_spill] sm:$0xff]  ;;  %v3266_v40 = vld [vmem:[#allocation38_spill] sm:$0xff] }
 0x4c3   :  { %3256 = vst [vmem:[#allocation46_spill] sm:$0xff] %v2830_v53  ;;  %v1298_v46 = vsub.f32 %v3260_v61, %v2783_v5  ;;  %v1300_v17 = vsub.f32 %v3261_v52, %v2783_v5  ;;  %v1302_v6 = vsub.f32 %v3262_v0, %v2783_v5  ;;  %v1304_v3 = vsub.f32 %v3263_v13, %v2783_v5  ;;  %v3267_v61 = vld [vmem:[#allocation13_spill] sm:$0xff]  ;;  %v3268_v52 = vld [vmem:[#allocation14_spill] sm:$0xff]  ;;  %v3269_v0 = vld [vmem:[#allocation15_spill] sm:$0xff] }
 0x4c4   :  { %v1306_v1 = vsub.f32 %v3264_v16, %v2783_v5  ;;  %v1308_v32 = vsub.f32 %v3265_v62, %v2783_v5  ;;  %v1310_v41 = vsub.f32 %v3266_v40, %v2783_v5  ;;  %v1312_v63 = vsub.f32 %v3267_v61, %v2783_v5  ;;  %v3270_v13 = vld [vmem:[#allocation16_spill] sm:$0xff]  ;;  %v3271_v16 = vld [vmem:[#allocation17_spill] sm:$0xff]  ;;  %v3273_v40 = vld [vmem:[#allocation43_spill] sm:$0xff] }
 0x4c5   :  { %v1314_v56 = vsub.f32 %v3268_v52, %v2783_v5  ;;  %v1316_v51 = vsub.f32 %v3269_v0, %v2783_v5  ;;  %v1318_v37 = vsub.f32 %v3270_v13, %v2783_v5  ;;  %v1320_v53 = vsub.f32 %v3271_v16, %v2783_v5  ;;  %v3272_v62 = vld [vmem:[#allocation8_spill] sm:$0xff]  ;;  %v3274_v61 = vld [vmem:[#allocation45_spill] sm:$0xff]  ;;  %v3275_v52 = vld [vmem:[#allocation7_spill] sm:$0xff] }
 0x4c6   :  { %v1322_v31 = vsub.f32 %v3272_v62, %v2783_v5  ;;  %v1324_v35 = vsub.f32 %v3273_v40, %v2783_v5  ;;  %v1326_v12 = vsub.f32 %v3274_v61, %v2783_v5  ;;  %v1328_v43 = vsub.f32 %v3275_v52, %v2783_v5  ;;  %v3276_v0 = vld [vmem:[#allocation41_spill] sm:$0xff]  ;;  %v3277_v13 = vld [vmem:[#allocation42_spill] sm:$0xff] }
 0x4c7   :  { %v1330_v54 = vsub.f32 %v3276_v0, %v2783_v5  ;;  %v3278_v16 = vsub.f32 %v2562_v34, %v3277_v13  ;;  %v3279_v62 = vld [vmem:[#allocation25_spill] sm:$0xff]  ;;  %v3281_v52 = vld [vmem:[#allocation26_spill] sm:$0xff]  ;;  %v3283_v5 = vld [vmem:[#allocation27_spill] sm:$0xff] }
 0x4c8   :  { %v3280_v40 = vsub.f32 %v3279_v62, %v3277_v13  ;;  %v3282_v0 = vsub.f32 %v3281_v52, %v3277_v13  ;;  %v3284_v34 = vsub.f32 %v3283_v5, %v3277_v13  ;;  %v1341_v5 = vpack.c.bf16 %v1285_v28, %v1283_v49 }
 0x4c9   :  { %v2901_v28 = vpack.c.bf16 %v1313_v2, %v1311_v21  ;;  %v2903_v49 = vpack.c.bf16 %v1317_v26, %v1315_v23  ;;  %v2913_v21 = vpack.c.bf16 %v1314_v56, %v1312_v63  ;;  %v2915_v2 = vpack.c.bf16 %v1318_v37, %v1316_v51 }
 0x4ca   :  { %v1335_v61 = vpack.c.bf16 %v3280_v40, %v3278_v16  ;;  %v1337_v62 = vpack.c.bf16 %v3284_v34, %v3282_v0  ;;  %v3285_v16 = vld [vmem:[#allocation28_spill] sm:$0xff]  ;;  %v1343_v0 = vpack.c.bf16 %v1289_v29, %v1287_v42  ;;  %v1345_v34 = vpack.c.bf16 %v1293_v45, %v1291_v58 }
 0x4cb   :  { %v3286_v40 = vsub.f32 %v3285_v16, %v3277_v13  ;;  %v2893_v13 = vpack.c.bf16 %v1297_v36, %v1295_v4  ;;  %v2895_v16 = vpack.c.bf16 %v1301_v60, %v1299_v48  ;;  %v2905_v29 = vpack.c.bf16 %v1321_v44, %v1319_v50 }
 0x4cc   :  { %v2907_v42 = vpack.c.bf16 %v1325_v10, %v1323_v47  ;;  %v2909_v45 = vpack.c.bf16 %v1329_v18, %v1327_v59  ;;  %v1336_v58 = vpack.c.bf16 %v1274_v20, %v1272_v38  ;;  %v1338_v4 = vpack.c.bf16 %v1278_v7, %v1276_v30 }
 0x4cd   :  { %v1339_v52 = vpack.c.bf16 %v1281_v11, %v3286_v40  ;;  %3287 = vst [vmem:[#allocation44_spill] sm:$0xff] %v2893_v13  ;;  %v2897_v11 = vpack.c.bf16 %v1305_v8, %v1303_v55  ;;  %v2899_v40 = vpack.c.bf16 %v1309_v33, %v1307_v14  ;;  %v1340_v36 = vpack.c.bf16 %v1282_v15, %v1280_v9 }
 0x4ce   :  { %v1342_v13 = vpack.c.bf16 %v1286_v39, %v1284_v57  ;;  %v1344_v48 = vpack.c.bf16 %v1290_v22, %v1288_v25  ;;  %v1346_v60 = vpack.c.bf16 %v1294_v24, %v1292_v19  ;;  %v1348_v55 = vpack.c.bf16 %v1298_v46, %v1296_v27 }
 0x4cf   :  { %v1350_v8 = vpack.c.bf16 %v1302_v6, %v1300_v17  ;;  %v1352_v14 = vpack.c.bf16 %v1306_v1, %v1304_v3  ;;  %v2911_v33 = vpack.c.bf16 %v1310_v41, %v1308_v32  ;;  %v2917_v23 = vpack.c.bf16 %v1322_v31, %v1320_v53 }
 0x4d0   :  { %v2919_v26 = vpack.c.bf16 %v1326_v12, %v1324_v35  ;;  %v2921_v50 = vpack.c.bf16 %v1330_v54, %v1328_v43  ;;  %v1368_v44 = vmul.bf16 1069105081, %v1335_v61  ;;  %v1371_v47 = vmul.bf16 1069105081, %v1336_v58 }
 0x4d1   :  { %v1377_v10 = vmul.bf16 1069105081, %v1338_v4  ;;  %v1374_v59 = vmul.bf16 1069105081, %v1337_v62  ;;  %v1383_v18 = vmul.bf16 1069105081, %v1340_v36 }
 0x4d2   :  { %1717 = vpow.bf16 %v1371_v47  ;;  %v1380_v41 = vmul.bf16 1069105081, %v1339_v52  ;;  %v1389_v56 = vmul.bf16 1069105081, %v1342_v13  ;;  %v1386_v51 = vmul.bf16 1069105081, %v1341_v5 }
 0x4d3   :  { %1719 = vpow.bf16 %v1368_v44  ;;  %v1395_v31 = vmul.bf16 1069105081, %v1344_v48  ;;  %v1392_v54 = vmul.bf16 1069105081, %v1343_v0  ;;  %v1401_v63 = vmul.bf16 1069105081, %v1346_v60 }
 0x4d4   :  { %1721 = vpow.bf16 %v1377_v10  ;;  %v1398_v38 = vmul.bf16 1069105081, %v1345_v34  ;;  %v1407_v20 = vmul.bf16 1069105081, %v1348_v55  ;;  %v3288_v9 = vld [vmem:[#allocation44_spill] sm:$0xff] }
 0x4d5   :  { %1723 = vpow.bf16 %v1374_v59  ;;  %v1404_v15 = vmul.bf16 1069105081, %v3288_v9  ;;  %v1413_v57 = vmul.bf16 1069105081, %v1350_v8  ;;  %v1410_v25 = vmul.bf16 1069105081, %v2895_v16 }
 0x4d6   :  { %1725 = vpow.bf16 %v1383_v18  ;;  %v1419_v22 = vmul.bf16 1069105081, %v1352_v14  ;;  %v1416_v27 = vmul.bf16 1069105081, %v2897_v11  ;;  %v1425_v46 = vmul.bf16 1069105081, %v2911_v33 }
 0x4d7   :  { %1727 = vpow.bf16 %v1380_v41  ;;  %v1422_v3 = vmul.bf16 1069105081, %v2899_v40  ;;  %v1431_v1 = vmul.bf16 1069105081, %v2913_v21  ;;  %v1428_v52 = vmul.bf16 1069105081, %v2901_v28 }
 0x4d8   :  { %1729 = vpow.bf16 %v1389_v56  ;;  %v1437_v5 = vmul.bf16 1069105081, %v2915_v2  ;;  %v1434_v13 = vmul.bf16 1069105081, %v2903_v49  ;;  %v1443_v16 = vmul.bf16 1069105081, %v2917_v23 }
 0x4d9   :  { %1731 = vpow.bf16 %v1386_v51  ;;  %v1440_v28 = vmul.bf16 1069105081, %v2905_v29  ;;  %v1449_v58 = vmul.bf16 1069105081, %v2919_v26  ;;  %v1446_v36 = vmul.bf16 1069105081, %v2907_v42 }
 0x4da   :  { %1733 = vpow.bf16 %v1395_v31  ;;  %v1455_v48 = vmul.bf16 1069105081, %v2921_v50  ;;  %v1452_v29 = vmul.bf16 1069105081, %v2909_v45  ;;  %v3289_v8 = vld [vmem:[#allocation46_spill] sm:$0xff]  ;;  %v3292_v18 = vld [vmem:[#allocation20_spill] sm:$0xff] }
 0x4db   :  { %1735 = vpow.bf16 %v1392_v54  ;;  %v1461_v14 = vmul.bf16 1069105081, %v3289_v8  ;;  %v3290_v2 = vld [vmem:[#allocation18_spill] sm:$0xff]  ;;  %v3291_v59 = vmov 1065369472   ;;  %v3295_v51 = vld [vmem:[#allocation19_spill] sm:$0xff] }
 0x4dc   :  { %1737 = vpow.bf16 %v1401_v63  ;;  %v1458_v23 = vmul.bf16 1069105081, %v3290_v2  ;;  %v3293_v41 = vld [vmem:[#allocation22_spill] sm:$0xff]  ;;  %v3296_v31 = vld [vmem:[#allocation21_spill] sm:$0xff] }
 0x4dd   :  { %v2923_v12 = vpop.eup %1717  ;;  %1739 = vpow.bf16 %v1398_v38  ;;  %v3294_v56 = vpack.c.bf16 %v3292_v18, %v3293_v41  ;;  %v3298_v38 = vld [vmem:[#allocation23_spill] sm:$0xff] }
 0x4de   :  { %v2925_v43 = vpop.eup %1719  ;;  %1463 = vmatprep.subr.bf16.mxu1 %v2923_v12  ;;  %1741 = vpow.bf16 %v1407_v20 }
 0x4df   :  { %v2928_v35 = vpop.eup %1721  ;;  %1464 = vmatpush1.bf16.msra.mxu1 %v2925_v43  ;;  %1743 = vpow.bf16 %v1404_v15 }
 0x4e0   :  { %1465 = vmatprep.subr.bf16.mxu1 %v2928_v35  ;;  %v2932_v32 = vpop.eup %1723  ;;  %1745 = vpow.bf16 %v1413_v57 }
 0x4e1   :  { %v2934_v37 = vpop.eup %1725  ;;  %1747 = vpow.bf16 %v1410_v25 }
 0x4e2   :  { %v2938_v30 = vpop.eup %1727  ;;  %1749 = vpow.bf16 %v1419_v22 }
 0x4e3   :  { %1466 = vmatpush1.bf16.msra.mxu1 %v2932_v32  ;;  %v2940_v7 = vpop.eup %1729  ;;  %1751 = vpow.bf16 %v1416_v27 }
 0x4e4   :  { %1467 = vmatprep.subr.bf16.mxu1 %v2934_v37  ;;  %v2945_v53 = vpop.eup %1731  ;;  %1753 = vpow.bf16 %v1425_v46 }
 0x4e5   :  { %v2947_v39 = vpop.eup %1733  ;;  %1755 = vpow.bf16 %v1422_v3 }
 0x4e6   :  { %v2952_v19 = vpop.eup %1735  ;;  %1757 = vpow.bf16 %v1431_v1  ;;  %v1791_v1 = vld [vmem:[%s3051_s0 + $0x30] sm:$0xff] }
 0x4e7   :  { %1468 = vmatpush1.bf16.msra.mxu1 %v2938_v30  ;;  %v2954_v24 = vpop.eup %1737  ;;  %1759 = vpow.bf16 %v1428_v52 }
 0x4e8   :  { %1469 = vmatprep.subr.bf16.mxu1 %v2940_v7  ;;  %v2960_v17 = vpop.eup %1739  ;;  %1761 = vpow.bf16 %v1437_v5 }
 0x4e9   :  { %v2962_v6 = vpop.eup %1741  ;;  %1763 = vpow.bf16 %v1434_v13 }
 0x4ea   :  { %v2968_v61 = vpop.eup %1743  ;;  %1765 = vpow.bf16 %v1443_v16 }
 0x4eb   :  { %1470 = vmatpush1.bf16.msra.mxu1 %v2945_v53  ;;  %v2970_v62 = vpop.eup %1745  ;;  %1767 = vpow.bf16 %v1440_v28 }
 0x4ec   :  { %1471 = vmatprep.subr.bf16.mxu1 %v2947_v39  ;;  %v2976_v0 = vpop.eup %1747  ;;  %1769 = vpow.bf16 %v1449_v58 }
 0x4ed   :  { %v2978_v34 = vpop.eup %1749  ;;  %1771 = vpow.bf16 %v1446_v36 }
 0x4ee   :  { %v2984_v11 = vpop.eup %1751  ;;  %1773 = vpow.bf16 %v1455_v48 }
 0x4ef   :  { %1472 = vmatpush1.bf16.msra.mxu1 %v2952_v19  ;;  %v2986_v40 = vpop.eup %1753  ;;  %1775 = vpow.bf16 %v1452_v29 }
 0x4f0   :  { %1473 = vmatprep.subr.bf16.mxu1 %v2954_v24  ;;  %v1756_v49 = vpop.eup %1755  ;;  %1777 = vpow.bf16 %v1461_v14 }
 0x4f1   :  { %v1758_v4 = vpop.eup %1757  ;;  %1779 = vpow.bf16 %v1458_v23 }
 0x4f2   :  { %v1760_v60 = vpop.eup %1759 }
 0x4f3   :  { %1474 = vmatpush1.bf16.msra.mxu1 %v2960_v17  ;;  %v1762_v55 = vpop.eup %1761 }
 0x4f4   :  { %1475 = vmatprep.subr.bf16.mxu1 %v2962_v6  ;;  %v1764_v33 = vpop.eup %1763 }
 0x4f5   :  { %v1766_v21 = vpop.eup %1765 }
 0x4f6   :  { %v1768_v42 = vpop.eup %1767 }
 0x4f7   :  { %1476 = vmatpush1.bf16.msra.mxu1 %v2968_v61  ;;  %v1770_v26 = vpop.eup %1769 }
 0x4f8   :  { %1477 = vmatprep.subr.bf16.mxu1 %v2970_v62  ;;  %v1772_v50 = vpop.eup %1771 }
 0x4f9   :  { %v1774_v45 = vpop.eup %1773 }
 0x4fa   :  { %v1776_v44 = vpop.eup %1775 }
 0x4fb   :  { %1478 = vmatpush1.bf16.msra.mxu1 %v2976_v0  ;;  %v1778_v47 = vpop.eup %1777 }
 0x4fc   :  { %1479 = vmatprep.subr.bf16.mxu1 %v2978_v34  ;;  %v1780_v10 = vpop.eup %1779 }
 0x4ff   :  { %1480 = vmatpush1.bf16.msra.mxu1 %v2984_v11 }
 0x500   :  { %1481 = vmatprep.subr.bf16.mxu1 %v2986_v40 }
 0x503   :  { %1482 = vmatpush1.bf16.msra.mxu1 %v1756_v49 }
 0x504   :  { %1483 = vmatprep.subr.bf16.mxu1 %v1758_v4 }
 0x507   :  { %1484 = vmatpush1.bf16.msra.mxu1 %v1760_v60 }
 0x508   :  { %1485 = vmatprep.subr.bf16.mxu1 %v1762_v55 }
 0x50b   :  { %1486 = vmatpush1.bf16.msra.mxu1 %v1764_v33 }
 0x50c   :  { %1487 = vmatprep.subr.bf16.mxu1 %v1766_v21 }
 0x50f   :  { %1488 = vmatpush1.bf16.msra.mxu1 %v1768_v42 }
 0x510   :  { %1489 = vmatprep.subr.bf16.mxu1 %v1770_v26 }
 0x513   :  { %1490 = vmatpush1.bf16.msra.mxu1 %v1772_v50 }
 0x514   :  { %1491 = vmatprep.subr.bf16.mxu1 %v1774_v45 }
 0x517   :  { %1492 = vmatpush1.bf16.msra.mxu1 %v1776_v44 }
 0x518   :  { %1493 = vmatprep.subr.bf16.mxu1 %v1778_v47 }
 0x51b   :  { %1494 = vmatpush1.bf16.msra.mxu1 %v1780_v10 }
 0x51c   :  { %1504 = vmatprep.subr.bf16.mxu1 %v2923_v12  ;;  %v3297_v12 = vpack.c.bf16 %v3295_v51, %v3296_v31 }
 0x51e   :  { %1496 = vmatmul.mubr.bf16.vlgmr.msra.gmra.mrb[72].mxu1 %v3291_v59 }
 0x51f   :  { %1505 = vmatpush1.bf16.msra.mxu1 %v2925_v43  ;;  %1536 = vmatprep.mubr.bf16.mxu1 %v3294_v56 }
 0x520   :  { %1506 = vmatprep.subr.bf16.mxu1 %v2928_v35 }
 0x523   :  { %1507 = vmatpush1.bf16.msra.mxu1 %v2932_v32 }
 0x524   :  { %1508 = vmatprep.subr.bf16.mxu1 %v2934_v37 }
 0x527   :  { %1509 = vmatpush1.bf16.msra.mxu1 %v2938_v30 }
 0x528   :  { %1510 = vmatprep.subr.bf16.mxu1 %v2940_v7  ;;  %v3299_v7 = vld [vmem:[#allocation24_spill] sm:$0xff] }
 0x52b   :  { %1511 = vmatpush1.bf16.msra.mxu1 %v2945_v53 }
 0x52c   :  { %1512 = vmatprep.subr.bf16.mxu1 %v2947_v39 }
 0x52f   :  { %1513 = vmatpush1.bf16.msra.mxu1 %v2952_v19  ;;  %v1789_v19 = vld [vmem:[%s3051_s0 + $0x20] sm:$0xff] }
 0x530   :  { %1514 = vmatprep.subr.bf16.mxu1 %v2954_v24 }
 0x533   :  { %1515 = vmatpush1.bf16.msra.mxu1 %v2960_v17  ;;  %v1790_v17 = vld [vmem:[%s3051_s0 + $0x28] sm:$0xff] }
 0x534   :  { %1516 = vmatprep.subr.bf16.mxu1 %v2962_v6 }
 0x537   :  { %1517 = vmatpush1.bf16.msra.mxu1 %v2968_v61 }
 0x538   :  { %1518 = vmatprep.subr.bf16.mxu1 %v2970_v62  ;;  %v1792_v62 = vld [vmem:[%s3051_s0 + $0x38] sm:$0xff] }
 0x53b   :  { %1519 = vmatpush1.bf16.msra.mxu1 %v2976_v0 }
 0x53c   :  { %1520 = vmatprep.subr.bf16.mxu1 %v2978_v34 }
 0x53f   :  { %1521 = vmatpush1.bf16.msra.mxu1 %v2984_v11 }
 0x540   :  { %1522 = vmatprep.subr.bf16.mxu1 %v2986_v40 }
 0x543   :  { %1523 = vmatpush1.bf16.msra.mxu1 %v1756_v49 }
 0x544   :  { %1524 = vmatprep.subr.bf16.mxu1 %v1758_v4 }
 0x547   :  { %1525 = vmatpush1.bf16.msra.mxu1 %v1760_v60 }
 0x548   :  { %1526 = vmatprep.subr.bf16.mxu1 %v1762_v55 }
 0x54b   :  { %1527 = vmatpush1.bf16.msra.mxu1 %v1764_v33 }
 0x54c   :  { %1528 = vmatprep.subr.bf16.mxu1 %v1766_v21 }
 0x54f   :  { %1529 = vmatpush1.bf16.msra.mxu1 %v1768_v42 }
 0x550   :  { %1530 = vmatprep.subr.bf16.mxu1 %v1770_v26 }
 0x553   :  { %1531 = vmatpush1.bf16.msra.mxu1 %v1772_v50 }
 0x554   :  { %1532 = vmatprep.subr.bf16.mxu1 %v1774_v45 }
 0x557   :  { %1533 = vmatpush1.bf16.msra.mxu1 %v1776_v44 }
 0x558   :  { %1534 = vmatprep.subr.bf16.mxu1 %v1778_v47 }
 0x55b   :  { %1535 = vmatpush1.bf16.msra.mxu1 %v1780_v10 }
 0x55e   :  { %1537 = vmatmul.mubr.bf16.vlgmr.msra.gmra.mrb[76].mxu1 %v3297_v12 }
 0x5f1   :  { %v1497_v43 = vpop.f32.mrb[72].mxu1 }
 0x5f2   :  { %v1499_v35 = vpop.f32.mrb[73].mxu1  ;;  %1781 = vrcp.f32 %v1497_v43 }
 0x5f3   :  { %v1501_v54 = vpop.f32.mrb[74].mxu1  ;;  %1783 = vrcp.f32 %v1499_v35 }
 0x5f4   :  { %v1502_v63 = vpop.f32.mrb[75].mxu1 }
 0x5fc   :  { %v1782_v32 = vpop.eup %1781 }
 0x5fd   :  { %v1784_v37 = vpop.eup %1783  ;;  %v1549_v20 = vmul.f32 %v1782_v32, %v3298_v38 }
 0x5fe   :  { %v1550_v30 = vmul.f32 %v1784_v37, %v3298_v38 }
 0x5ff   :  { %v1554_v9 = vrot.slane %v1549_v20, %v3299_v7 }
 0x600   :  { %v1558_v57 = vrot.slane %v1550_v30, %v3299_v7 }
 0x631   :  { %v1538_v15 = vpop.f32.mrb[76].mxu1 }
 0x632   :  { %v1559_v53 = vmul.f32 %v1554_v9, %v1538_v15  ;;  %v1540_v39 = vpop.f32.mrb[77].mxu1 }
 0x633   :  { %v1560_v25 = vmul.f32 %v1558_v57, %v1540_v39  ;;  %v1542_v22 = vpop.f32.mrb[78].mxu1 }
 0x634   :  { %v1563_v24 = vadd.f32 %v1789_v19, %v1559_v53  ;;  %v1561_v27 = vmul.f32 %v1554_v9, %v1542_v22  ;;  %v1544_v46 = vpop.f32.mrb[79].mxu1 }
 0x635   :  { %v1564_v6 = vadd.f32 %v1790_v17, %v1560_v25  ;;  %v1562_v3 = vmul.f32 %v1558_v57, %v1544_v46 }
 0x636   :  { %1568 = vst [vmem:[#allocation3 + $0x20] sm:$0xff] %v1563_v24  ;;  %v1565_v61 = vadd.f32 %v1791_v1, %v1561_v27 }
 0x637   :  { %1569 = vst [vmem:[#allocation3 + $0x28] sm:$0xff] %v1564_v6  ;;  %v1566_v52 = vadd.f32 %v1792_v62, %v1562_v3 }
 0x638   :  { %1570 = vst [vmem:[#allocation3 + $0x30] sm:$0xff] %v1565_v61 }
 0x639   :  { %1571 = vst [vmem:[#allocation3 + $0x38] sm:$0xff] %v1566_v52 }
 0x63a   :  { %1804 = shalt.err (!%p1801_p4)
}
 0x63b   :  { %s1805_s13 = scalar_lea.hbm %s3055_s4, 1024 }
 0x63c   :  { %p1806_p5 = scmp.ne.s32.totalorder %s3055_s4, %s1805_s13  ;;  %p1809_p6 = scmp.lt.u32.totalorder %s1805_s13, %s3055_s4 }
 0x63e   :  { %p1811_p7 = pnand %p1809_p6, %p1806_p5 }
 0x640   :  { %1814 = shalt.err (!%p1811_p7)
}
 0x641   :  { %s1821_s17 = smov 256   ;;  %s1822_s18 = smov 16  }
 0x642   :  { %1583 = dma.vmem_to_hbm [thread:$0]  %s1578_s5, 1024, %s3055_s4, [#allocation4], %s1821_s17, %s1821_s17, %s1822_s18  }
 0x643   :  { %1815 = dma.done.wait [#allocation4], 1024  }
 0x644   :  { %1816 = vsyncadd [#allocation4], 4294966272 }
 0x645   :  { %1587 = vsyncpa [#allocation4], 1 }

</bundles_post_ra>
